<compile_context>
chip_gen: v6e
topology: v6e:2x2x1
jax: 0.10.0
libtpu: 0.0.40
codegen_flags: <defaults>
</compile_context>

<pallas_src>
import functools

import jax
import jax.numpy as jnp
from jax.experimental import pallas as pl
from jax.experimental.pallas import tpu as pltpu

LANE = 128
BN_EPS = 1e-5


def _round_up(x, m):
    return (x + m - 1) // m * m


@functools.lru_cache(maxsize=None)
def _vmem_limit_bytes():
    """Generation-aware VMEM limit: ~75% of physical, capped at 96 MiB."""
    try:
        cap = int(pltpu.get_tpu_info().vmem_capacity_bytes)
    except Exception:
        cap = 64 * 1024 * 1024          # conservative fallback (v7x-sized)
    return min(cap * 3 // 4, 96 * 1024 * 1024)


def _grid_invariant_spec(shape, index_map):
    """Single-buffer a grid-invariant operand (one VMEM copy, one DMA)."""
    try:
        return pl.BlockSpec(shape, index_map,
                            pipeline_mode=pl.Buffered(buffer_count=1))
    except (AttributeError, TypeError):
        return pl.BlockSpec(shape, index_map)


# ----------------------------------------------------------------------------
# Kernel
# ----------------------------------------------------------------------------
def _make_kernel(H1, W1, stride, has_projection):
    HW = H1 * W1

    def kernel(*refs):
        if has_projection:
            x_ref, w1_ref, w2_ref, wsc_ref, bn_ref, out_ref, pad_ref = refs
        else:
            x_ref, w1_ref, w2_ref, bn_ref, out_ref, pad_ref = refs
            wsc_ref = None
        cin_p = x_ref.shape[-1]       # padded input channels (multiple of 128)
        c_p = out_ref.shape[-1]       # padded output channels (multiple of 128)

        def grouped_conv3x3(tap_fn, w_ref, ch):
            # tap_fn(t) -> (HW, ch) bf16 slab for tap t = kh*3 + kw.
            # Group taps so K >= 256 per MXU matmul without materializing the
            # full (HW, 9*ch) im2col buffer; accumulate partials in f32.
            gsz = 2 if ch <= 128 else 1
            acc = None
            for t0 in range(0, 9, gsz):
                idxs = list(range(t0, min(t0 + gsz, 9)))
                slabs = [tap_fn(t) for t in idxs]
                a = slabs[0] if len(slabs) == 1 else jnp.concatenate(slabs, axis=1)
                w = w_ref[idxs[0] * ch:(idxs[-1] + 1) * ch, :]
                part = jnp.dot(a, w, preferred_element_type=jnp.float32)
                acc = part if acc is None else acc + part
            return acc

        # --- conv1: 9 contiguous phase-plane taps (bf16), grouped MXU matmuls
        def conv1_tap(t):
            kh, kw = t // 3, t % 3
            p = (kh % stride) * stride + (kw % stride)    # phase plane
            oh, ow = kh // stride, kw // stride           # in-plane offset
            return x_ref[0, p, oh:oh + H1, ow:ow + W1, :].reshape(HW, cin_p)

        acc1 = grouped_conv3x3(conv1_tap, w1_ref, cin_p)
        out1 = jnp.maximum(acc1 * bn_ref[0:1, :] + bn_ref[1:2, :], 0.0)

        # --- conv2 (3x3, stride 1, pad 1) via bf16 zero-halo VMEM scratch ----
        # Re-zero only the 1-wide halo (cheap); interior is rewritten below.
        # Not gated on program_id==0: the grid axis is "parallel", each core
        # has its own scratch and only one core ever sees program_id 0.
        zrow = jnp.zeros((1, W1 + 2, c_p), pad_ref.dtype)
        pad_ref[0:1, :, :] = zrow
        pad_ref[H1 + 1:H1 + 2, :, :] = zrow
        zcol = jnp.zeros((H1 + 2, 1, c_p), pad_ref.dtype)
        pad_ref[:, 0:1, :] = zcol
        pad_ref[:, W1 + 1:W1 + 2, :] = zcol

        pad_ref[1:H1 + 1, 1:W1 + 1, :] = (
            out1.reshape(H1, W1, c_p).astype(pad_ref.dtype))

        def conv2_tap(t):
            kh, kw = t // 3, t % 3
            return pad_ref[kh:kh + H1, kw:kw + W1, :].reshape(HW, c_p)

        acc2 = grouped_conv3x3(conv2_tap, w2_ref, c_p)
        out2 = acc2 * bn_ref[2:3, :] + bn_ref[3:4, :]

        # --- shortcut ---------------------------------------------------------
        if has_projection:
            # Strided 1x1 conv: the x[::s, ::s] samples live in one phase plane.
            p = (1 % stride) * stride + (1 % stride)
            o = 1 // stride
            xs = x_ref[0, p, o:o + H1, o:o + W1, :].reshape(HW, cin_p)
            sc = jnp.dot(xs, wsc_ref[...], preferred_element_type=jnp.float32)
            sc = sc * bn_ref[4:5, :] + bn_ref[5:6, :]
        else:
            # Identity shortcut: stride == 1 and cin_p == c_p; centre tap is x.
            sc = x_ref[0, 0, 1:1 + H1, 1:1 + W1, :].reshape(HW, c_p)
            sc = sc.astype(jnp.float32)

        # --- residual add + ReLU, lane-dense bf16 store -----------------------
        out = jnp.maximum(out2 + sc, 0.0)
        out_ref[0] = out.reshape(H1, W1, c_p).astype(out_ref.dtype)

    return kernel


# ----------------------------------------------------------------------------
# Parameter packing helpers (run in the XLA wrapper)
# ----------------------------------------------------------------------------
def _fold_bn(gamma, beta, mean, var, eps=BN_EPS):
    scale = gamma / jnp.sqrt(var + eps)
    return scale, beta - mean * scale


def _pack_conv3x3(w_oihw, cin_p, cout_p):
    """(C, Cin, 3, 3) OIHW -> (9*cin_p, cout_p) bf16, tap-major rows."""
    cout, cin = w_oihw.shape[0], w_oihw.shape[1]
    w = jnp.transpose(w_oihw, (2, 3, 1, 0)).reshape(9, cin, cout)
    w = jnp.pad(w, ((0, 0), (0, cin_p - cin), (0, cout_p - cout)))
    return w.reshape(9 * cin_p, cout_p).astype(jnp.bfloat16)


def _pack_conv1x1(w_oihw, cin_p, cout_p):
    """(C, Cin, 1, 1) OIHW -> (cin_p, cout_p) bf16."""
    cout, cin = w_oihw.shape[0], w_oihw.shape[1]
    w = jnp.transpose(w_oihw.reshape(cout, cin), (1, 0))
    w = jnp.pad(w, ((0, cin_p - cin), (0, cout_p - cout)))
    return w.astype(jnp.bfloat16)


# ----------------------------------------------------------------------------
# Forward pass
# ----------------------------------------------------------------------------
@functools.partial(jax.jit, static_argnames=("stride",))
def basic_block_forward(x_nchw, params, *, stride):
    # bf16 activations for the MXU path (accumulation / BN / add stay f32).
    x = jnp.transpose(x_nchw, (0, 2, 3, 1)).astype(jnp.bfloat16)   # NHWC
    N, H, W, Cin = x.shape
    C = params["conv1_w"].shape[0]
    has_projection = (stride != 1) or (Cin != C)

    cin_p = _round_up(Cin, LANE)
    c_p = _round_up(C, LANE)
    H1 = (H - 1) // stride + 1
    W1 = (W - 1) // stride + 1
    Hp = -(-(H + 2) // stride)           # phase-plane height
    Wp = -(-(W + 2) // stride)           # phase-plane width
    nphase = stride * stride

    # Pad: 1-wide spatial halo for conv1, channels to the 128-lane width, and
    # spatial extent up to a multiple of `stride` so phase planes are equal.
    xpad = jnp.pad(x, ((0, 0),
                       (1, 1 + Hp * stride - (H + 2)),
                       (1, 1 + Wp * stride - (W + 2)),
                       (0, cin_p - Cin)))
    if stride == 1:
        # Phase decomposition is the identity for stride 1; skip the
        # reshape/transpose so XLA doesn't materialize an extra HBM copy.
        phases = xpad[:, None]                            # (N, 1, Hp, Wp, cin_p)
    else:
        # phases[n, ph_h*stride + ph_w, r, q, c] =
        #     xpad[n, ph_h + stride*r, ph_w + stride*q, c]
        phases = xpad.reshape(N, Hp, stride, Wp, stride, cin_p)
        phases = jnp.transpose(phases, (0, 2, 4, 1, 3, 5))
        phases = phases.reshape(N, nphase, Hp, Wp, cin_p)

    w1 = _pack_conv3x3(params["conv1_w"], cin_p, c_p)
    w2 = _pack_conv3x3(params["conv2_w"], c_p, c_p)
    s1, b1 = _fold_bn(*params["bn1"])
    s2, b2 = _fold_bn(*params["bn2"])
    if has_projection:
        wsc = _pack_conv1x1(params["sc_w"], cin_p, c_p)
        ssc, bsc = _fold_bn(*params["bn_sc"])
    else:
        ssc = jnp.zeros((C,), jnp.float32)
        bsc = jnp.zeros((C,), jnp.float32)
    bn = jnp.stack([s1, b1, s2, b2, ssc, bsc], axis=0)
    bn = jnp.pad(bn, ((0, 0), (0, c_p - C))).astype(jnp.float32)

    in_arrays = [phases, w1, w2]
    in_specs = [
        pl.BlockSpec((1, nphase, Hp, Wp, cin_p), lambda n: (n, 0, 0, 0, 0)),
        _grid_invariant_spec((9 * cin_p, c_p), lambda n: (0, 0)),
        _grid_invariant_spec((9 * c_p, c_p), lambda n: (0, 0)),
    ]
    if has_projection:
        in_arrays.append(wsc)
        in_specs.append(_grid_invariant_spec((cin_p, c_p), lambda n: (0, 0)))
    in_arrays.append(bn)
    in_specs.append(_grid_invariant_spec((6, c_p), lambda n: (0, 0)))

    kernel = _make_kernel(H1, W1, stride, has_projection)

    out_p = pl.pallas_call(
        kernel,
        out_shape=jax.ShapeDtypeStruct((N, H1, W1, c_p), jnp.bfloat16),
        grid=(N,),                                  # >= 2 steps keeps both
        in_specs=in_specs,                          # v7x TensorCores busy
        out_specs=pl.BlockSpec((1, H1, W1, c_p), lambda n: (n, 0, 0, 0)),
        scratch_shapes=[pltpu.VMEM((H1 + 2, W1 + 2, c_p), jnp.bfloat16)],
        compiler_params=pltpu.CompilerParams(
            dimension_semantics=("parallel",),
            vmem_limit_bytes=_vmem_limit_bytes()),
    )(*in_arrays)

    out = out_p[:, :, :, :C].astype(jnp.float32)    # drop lane padding
    return jnp.transpose(out, (0, 3, 1, 2))         # back to NCHW


# ----------------------------------------------------------------------------
# Pure-JAX reference (XLA convs, same bf16-operand / f32-accumulate numerics)
# ----------------------------------------------------------------------------
def reference_forward(x_nchw, params, stride):
    x = jnp.transpose(x_nchw, (0, 2, 3, 1)).astype(jnp.float32)
    Cin = x.shape[-1]
    C = params["conv1_w"].shape[0]
    dn = ("NHWC", "HWIO", "NHWC")

    def conv(v, w_oihw, strides, padding):
        w = jnp.transpose(w_oihw, (2, 3, 1, 0))     # HWIO
        return jax.lax.conv_general_dilated(
            v.astype(jnp.bfloat16), w.astype(jnp.bfloat16), strides, padding,
            dimension_numbers=dn, preferred_element_type=jnp.float32)

    def bn(v, p):
        g, b, m, var = p
        s = g / jnp.sqrt(var + BN_EPS)
        return v * s + (b - m * s)

    y = jnp.maximum(
        bn(conv(x, params["conv1_w"], (stride, stride), ((1, 1), (1, 1))),
           params["bn1"]), 0.0)
    y = bn(conv(y, params["conv2_w"], (1, 1), ((1, 1), (1, 1))), params["bn2"])
    if (stride != 1) or (Cin != C):
        sc = bn(conv(x, params["sc_w"], (stride, stride), ((0, 0), (0, 0))),
                params["bn_sc"])
    else:
        sc = x
    out = jnp.maximum(y + sc, 0.0)
    return jnp.transpose(out, (0, 3, 1, 2))


# ----------------------------------------------------------------------------
if __name__ == "__main__":
    key = jax.random.PRNGKey(0)

    def make_bn_params(k, c):
        kg, kb, km, kv = jax.random.split(k, 4)
        gamma = 1.0 + 0.1 * jax.random.normal(kg, (c,), jnp.float32)
        beta = 0.1 * jax.random.normal(kb, (c,), jnp.float32)
        mean = 0.1 * jax.random.normal(km, (c,), jnp.float32)
        var = jnp.abs(1.0 + 0.1 * jax.random.normal(kv, (c,), jnp.float32))
        return (gamma, beta, mean, var)

    N, H, W = 2, 16, 16
    # (in_planes, planes, stride): exercises both the projection shortcut and
    # the specialized identity shortcut.
    configs = [(4, 8, 2), (8, 8, 1)]

    for in_planes, planes, stride in configs:
        key, kx, kw1, kw2, kws, kb1, kb2, kbs = jax.random.split(key, 8)
        x = jax.random.normal(kx, (N, in_planes, H, W), jnp.float32)

        params = {
            "conv1_w": 0.2 * jax.random.normal(
                kw1, (planes, in_planes, 3, 3), jnp.float32),
            "bn1": make_bn_params(kb1, planes),
            "conv2_w": 0.2 * jax.random.normal(
                kw2, (planes, planes, 3, 3), jnp.float32),
            "bn2": make_bn_params(kb2, planes),
        }
        if stride != 1 or in_planes != planes:
            params["sc_w"] = 0.2 * jax.random.normal(
                kws, (planes, in_planes, 1, 1), jnp.float32)
            params["bn_sc"] = make_bn_params(kbs, planes)

        out = jax.block_until_ready(
            basic_block_forward(x, params, stride=stride))

        H1 = (H - 1) // stride + 1
        W1 = (W - 1) // stride + 1
        assert out.shape == (N, planes, H1, W1), out.shape

        ref = reference_forward(x, params, stride)
        # Tolerance covers bf16 conv operands (shared with the reference) plus
        # the bf16 output/shortcut rounding introduced for HBM-traffic savings.
        if not bool(jnp.allclose(out, ref, atol=3e-2, rtol=3e-2)):
            err = float(jnp.max(jnp.abs(out - ref)))
            raise SystemExit(
                f"Pallas kernel mismatch vs reference (stride={stride}, "
                f"in={in_planes}, out={planes}), max abs err={err}")

    print("KERNEL_OK")
</pallas_src>

<mosaic_0001>
module attributes {stable_mosaic.version = 11 : i64} {
  func.func @kernel(%arg0: i32, %arg1: memref<1x4x9x9x128xbf16, #tpu.memory_space<vmem>>, %arg2: memref<1152x128xbf16, #tpu.memory_space<vmem>>, %arg3: memref<1152x128xbf16, #tpu.memory_space<vmem>>, %arg4: memref<128x128xbf16, #tpu.memory_space<vmem>>, %arg5: memref<6x128xf32, #tpu.memory_space<vmem>>, %arg6: memref<1x8x8x128xbf16, #tpu.memory_space<vmem>>, %arg7: memref<10x10x128xbf16, #tpu.memory_space<vmem>>) attributes {dimension_semantics = [#tpu.dimension_semantics<parallel>], iteration_bounds = array<i64: 2>, scalar_prefetch = 0 : i64, scratch_operands = 1 : i64, tpu.core_type = #tpu.core_type<tc>, window_params = [{transform_indices = @transform_0, window_bounds = array<i64: 1, 4, 9, 9, 128>}, {pipeline_mode = #tpu.pipeline_mode<synchronous>, transform_indices = @transform_1, window_bounds = array<i64: 1152, 128>}, {pipeline_mode = #tpu.pipeline_mode<synchronous>, transform_indices = @transform_2, window_bounds = array<i64: 1152, 128>}, {pipeline_mode = #tpu.pipeline_mode<synchronous>, transform_indices = @transform_3, window_bounds = array<i64: 128, 128>}, {pipeline_mode = #tpu.pipeline_mode<synchronous>, transform_indices = @transform_4, window_bounds = array<i64: 6, 128>}, {transform_indices = @transform_5, window_bounds = array<i64: 1, 8, 8, 128>}]} {
    %c0 = arith.constant 0 : index
    %c0_0 = arith.constant 0 : index
    %c0_1 = arith.constant 0 : index
    %c0_2 = arith.constant 0 : index
    %c0_3 = arith.constant 0 : index
    %0 = vector.load %arg1[%c0, %c0_0, %c0_1, %c0_2, %c0_3] : memref<1x4x9x9x128xbf16, #tpu.memory_space<vmem>>, vector<1x1x8x8x128xbf16>
    %1 = vector.shape_cast %0 : vector<1x1x8x8x128xbf16> to vector<8x8x128xbf16>
    %2 = vector.shape_cast %1 : vector<8x8x128xbf16> to vector<64x128xbf16>
    %c0_4 = arith.constant 0 : index
    %c1 = arith.constant 1 : index
    %c0_5 = arith.constant 0 : index
    %c0_6 = arith.constant 0 : index
    %c0_7 = arith.constant 0 : index
    %3 = vector.load %arg1[%c0_4, %c1, %c0_5, %c0_6, %c0_7] : memref<1x4x9x9x128xbf16, #tpu.memory_space<vmem>>, vector<1x1x8x8x128xbf16>
    %4 = vector.shape_cast %3 : vector<1x1x8x8x128xbf16> to vector<8x8x128xbf16>
    %5 = vector.shape_cast %4 : vector<8x8x128xbf16> to vector<64x128xbf16>
    %6 = tpu.concatenate %2, %5 in 1 : vector<64x128xbf16>, vector<64x128xbf16> -> vector<64x256xbf16>
    %c0_8 = arith.constant 0 : index
    %c0_9 = arith.constant 0 : index
    %7 = vector.load %arg2[%c0_8, %c0_9] : memref<1152x128xbf16, #tpu.memory_space<vmem>>, vector<256x128xbf16>
    %cst = arith.constant dense<0.000000e+00> : vector<64x128xf32>
    %8 = tpu.matmul %6, %7, %cst {dimension_numbers = #tpu.dot_dimension_numbers<[1], [0], [0], [1], [0, 0, 1, 1], [], []>} : vector<64x256xbf16>, vector<256x128xbf16>, vector<64x128xf32> -> vector<64x128xf32>
    %c0_10 = arith.constant 0 : index
    %c0_11 = arith.constant 0 : index
    %c0_12 = arith.constant 0 : index
    %c1_13 = arith.constant 1 : index
    %c0_14 = arith.constant 0 : index
    %9 = vector.load %arg1[%c0_10, %c0_11, %c0_12, %c1_13, %c0_14] : memref<1x4x9x9x128xbf16, #tpu.memory_space<vmem>>, vector<1x1x8x8x128xbf16>
    %10 = vector.shape_cast %9 : vector<1x1x8x8x128xbf16> to vector<8x8x128xbf16>
    %11 = vector.shape_cast %10 : vector<8x8x128xbf16> to vector<64x128xbf16>
    %c0_15 = arith.constant 0 : index
    %c2 = arith.constant 2 : index
    %c0_16 = arith.constant 0 : index
    %c0_17 = arith.constant 0 : index
    %c0_18 = arith.constant 0 : index
    %12 = vector.load %arg1[%c0_15, %c2, %c0_16, %c0_17, %c0_18] : memref<1x4x9x9x128xbf16, #tpu.memory_space<vmem>>, vector<1x1x8x8x128xbf16>
    %13 = vector.shape_cast %12 : vector<1x1x8x8x128xbf16> to vector<8x8x128xbf16>
    %14 = vector.shape_cast %13 : vector<8x8x128xbf16> to vector<64x128xbf16>
    %15 = tpu.concatenate %11, %14 in 1 : vector<64x128xbf16>, vector<64x128xbf16> -> vector<64x256xbf16>
    %c256 = arith.constant 256 : index
    %c0_19 = arith.constant 0 : index
    %16 = vector.load %arg2[%c256, %c0_19] : memref<1152x128xbf16, #tpu.memory_space<vmem>>, vector<256x128xbf16>
    %cst_20 = arith.constant dense<0.000000e+00> : vector<64x128xf32>
    %17 = tpu.matmul %15, %16, %cst_20 {dimension_numbers = #tpu.dot_dimension_numbers<[1], [0], [0], [1], [0, 0, 1, 1], [], []>} : vector<64x256xbf16>, vector<256x128xbf16>, vector<64x128xf32> -> vector<64x128xf32>
    %18 = arith.addf %8, %17 : vector<64x128xf32>
    %c0_21 = arith.constant 0 : index
    %c3 = arith.constant 3 : index
    %c0_22 = arith.constant 0 : index
    %c0_23 = arith.constant 0 : index
    %c0_24 = arith.constant 0 : index
    %19 = vector.load %arg1[%c0_21, %c3, %c0_22, %c0_23, %c0_24] : memref<1x4x9x9x128xbf16, #tpu.memory_space<vmem>>, vector<1x1x8x8x128xbf16>
    %20 = vector.shape_cast %19 : vector<1x1x8x8x128xbf16> to vector<8x8x128xbf16>
    %21 = vector.shape_cast %20 : vector<8x8x128xbf16> to vector<64x128xbf16>
    %c0_25 = arith.constant 0 : index
    %c2_26 = arith.constant 2 : index
    %c0_27 = arith.constant 0 : index
    %c1_28 = arith.constant 1 : index
    %c0_29 = arith.constant 0 : index
    %22 = vector.load %arg1[%c0_25, %c2_26, %c0_27, %c1_28, %c0_29] : memref<1x4x9x9x128xbf16, #tpu.memory_space<vmem>>, vector<1x1x8x8x128xbf16>
    %23 = vector.shape_cast %22 : vector<1x1x8x8x128xbf16> to vector<8x8x128xbf16>
    %24 = vector.shape_cast %23 : vector<8x8x128xbf16> to vector<64x128xbf16>
    %25 = tpu.concatenate %21, %24 in 1 : vector<64x128xbf16>, vector<64x128xbf16> -> vector<64x256xbf16>
    %c512 = arith.constant 512 : index
    %c0_30 = arith.constant 0 : index
    %26 = vector.load %arg2[%c512, %c0_30] : memref<1152x128xbf16, #tpu.memory_space<vmem>>, vector<256x128xbf16>
    %cst_31 = arith.constant dense<0.000000e+00> : vector<64x128xf32>
    %27 = tpu.matmul %25, %26, %cst_31 {dimension_numbers = #tpu.dot_dimension_numbers<[1], [0], [0], [1], [0, 0, 1, 1], [], []>} : vector<64x256xbf16>, vector<256x128xbf16>, vector<64x128xf32> -> vector<64x128xf32>
    %28 = arith.addf %18, %27 : vector<64x128xf32>
    %c0_32 = arith.constant 0 : index
    %c0_33 = arith.constant 0 : index
    %c1_34 = arith.constant 1 : index
    %c0_35 = arith.constant 0 : index
    %c0_36 = arith.constant 0 : index
    %29 = vector.load %arg1[%c0_32, %c0_33, %c1_34, %c0_35, %c0_36] : memref<1x4x9x9x128xbf16, #tpu.memory_space<vmem>>, vector<1x1x8x8x128xbf16>
    %30 = vector.shape_cast %29 : vector<1x1x8x8x128xbf16> to vector<8x8x128xbf16>
    %31 = vector.shape_cast %30 : vector<8x8x128xbf16> to vector<64x128xbf16>
    %c0_37 = arith.constant 0 : index
    %c1_38 = arith.constant 1 : index
    %c1_39 = arith.constant 1 : index
    %c0_40 = arith.constant 0 : index
    %c0_41 = arith.constant 0 : index
    %32 = vector.load %arg1[%c0_37, %c1_38, %c1_39, %c0_40, %c0_41] : memref<1x4x9x9x128xbf16, #tpu.memory_space<vmem>>, vector<1x1x8x8x128xbf16>
    %33 = vector.shape_cast %32 : vector<1x1x8x8x128xbf16> to vector<8x8x128xbf16>
    %34 = vector.shape_cast %33 : vector<8x8x128xbf16> to vector<64x128xbf16>
    %35 = tpu.concatenate %31, %34 in 1 : vector<64x128xbf16>, vector<64x128xbf16> -> vector<64x256xbf16>
    %c768 = arith.constant 768 : index
    %c0_42 = arith.constant 0 : index
    %36 = vector.load %arg2[%c768, %c0_42] : memref<1152x128xbf16, #tpu.memory_space<vmem>>, vector<256x128xbf16>
    %cst_43 = arith.constant dense<0.000000e+00> : vector<64x128xf32>
    %37 = tpu.matmul %35, %36, %cst_43 {dimension_numbers = #tpu.dot_dimension_numbers<[1], [0], [0], [1], [0, 0, 1, 1], [], []>} : vector<64x256xbf16>, vector<256x128xbf16>, vector<64x128xf32> -> vector<64x128xf32>
    %38 = arith.addf %28, %37 : vector<64x128xf32>
    %c0_44 = arith.constant 0 : index
    %c0_45 = arith.constant 0 : index
    %c1_46 = arith.constant 1 : index
    %c1_47 = arith.constant 1 : index
    %c0_48 = arith.constant 0 : index
    %39 = vector.load %arg1[%c0_44, %c0_45, %c1_46, %c1_47, %c0_48] : memref<1x4x9x9x128xbf16, #tpu.memory_space<vmem>>, vector<1x1x8x8x128xbf16>
    %40 = vector.shape_cast %39 : vector<1x1x8x8x128xbf16> to vector<8x8x128xbf16>
    %41 = vector.shape_cast %40 : vector<8x8x128xbf16> to vector<64x128xbf16>
    %c1024 = arith.constant 1024 : index
    %c0_49 = arith.constant 0 : index
    %42 = vector.load %arg2[%c1024, %c0_49] : memref<1152x128xbf16, #tpu.memory_space<vmem>>, vector<128x128xbf16>
    %cst_50 = arith.constant dense<0.000000e+00> : vector<64x128xf32>
    %43 = tpu.matmul %41, %42, %cst_50 {dimension_numbers = #tpu.dot_dimension_numbers<[1], [0], [0], [1], [0, 0, 1, 1], [], []>} : vector<64x128xbf16>, vector<128x128xbf16>, vector<64x128xf32> -> vector<64x128xf32>
    %44 = arith.addf %38, %43 : vector<64x128xf32>
    %c0_51 = arith.constant 0 : index
    %c0_52 = arith.constant 0 : index
    %45 = vector.load %arg5[%c0_51, %c0_52] : memref<6x128xf32, #tpu.memory_space<vmem>>, vector<1x128xf32>
    %46 = vector.broadcast %45 : vector<1x128xf32> to vector<64x128xf32>
    %47 = arith.mulf %44, %46 : vector<64x128xf32>
    %c1_53 = arith.constant 1 : index
    %c0_54 = arith.constant 0 : index
    %48 = vector.load %arg5[%c1_53, %c0_54] : memref<6x128xf32, #tpu.memory_space<vmem>>, vector<1x128xf32>
    %49 = vector.broadcast %48 : vector<1x128xf32> to vector<64x128xf32>
    %50 = arith.addf %47, %49 : vector<64x128xf32>
    %cst_55 = arith.constant 0.000000e+00 : f32
    %51 = vector.broadcast %cst_55 : f32 to vector<64x128xf32>
    %52 = arith.maximumf %50, %51 : vector<64x128xf32>
    %cst_56 = arith.constant 0.000000e+00 : bf16
    %53 = vector.broadcast %cst_56 : bf16 to vector<1x10x128xbf16>
    %c0_57 = arith.constant 0 : index
    %c0_58 = arith.constant 0 : index
    %c0_59 = arith.constant 0 : index
    %54 = vector.load %arg7[%c0_57, %c0_58, %c0_59] : memref<10x10x128xbf16, #tpu.memory_space<vmem>>, vector<1x10x128xbf16>
    tpu.vector_store %arg7[%c0_57, %c0_58, %c0_59], %53 {strides = array<i32>} : memref<10x10x128xbf16, #tpu.memory_space<vmem>>, vector<1x10x128xbf16>,
    %c9 = arith.constant 9 : index
    %c0_60 = arith.constant 0 : index
    %c0_61 = arith.constant 0 : index
    %55 = vector.load %arg7[%c9, %c0_60, %c0_61] : memref<10x10x128xbf16, #tpu.memory_space<vmem>>, vector<1x10x128xbf16>
    tpu.vector_store %arg7[%c9, %c0_60, %c0_61], %53 {strides = array<i32>} : memref<10x10x128xbf16, #tpu.memory_space<vmem>>, vector<1x10x128xbf16>,
    %cst_62 = arith.constant 0.000000e+00 : bf16
    %56 = vector.broadcast %cst_62 : bf16 to vector<10x1x128xbf16>
    %c0_63 = arith.constant 0 : index
    %c0_64 = arith.constant 0 : index
    %c0_65 = arith.constant 0 : index
    %57 = vector.load %arg7[%c0_63, %c0_64, %c0_65] : memref<10x10x128xbf16, #tpu.memory_space<vmem>>, vector<10x1x128xbf16>
    tpu.vector_store %arg7[%c0_63, %c0_64, %c0_65], %56 {strides = array<i32>} : memref<10x10x128xbf16, #tpu.memory_space<vmem>>, vector<10x1x128xbf16>,
    %c0_66 = arith.constant 0 : index
    %c9_67 = arith.constant 9 : index
    %c0_68 = arith.constant 0 : index
    %58 = vector.load %arg7[%c0_66, %c9_67, %c0_68] : memref<10x10x128xbf16, #tpu.memory_space<vmem>>, vector<10x1x128xbf16>
    tpu.vector_store %arg7[%c0_66, %c9_67, %c0_68], %56 {strides = array<i32>} : memref<10x10x128xbf16, #tpu.memory_space<vmem>>, vector<10x1x128xbf16>,
    %59 = vector.shape_cast %52 : vector<64x128xf32> to vector<8x8x128xf32>
    %60 = arith.truncf %59 : vector<8x8x128xf32> to vector<8x8x128xbf16>
    %c1_69 = arith.constant 1 : index
    %c1_70 = arith.constant 1 : index
    %c0_71 = arith.constant 0 : index
    %61 = vector.load %arg7[%c1_69, %c1_70, %c0_71] : memref<10x10x128xbf16, #tpu.memory_space<vmem>>, vector<8x8x128xbf16>
    tpu.vector_store %arg7[%c1_69, %c1_70, %c0_71], %60 {strides = array<i32>} : memref<10x10x128xbf16, #tpu.memory_space<vmem>>, vector<8x8x128xbf16>,
    %c0_72 = arith.constant 0 : index
    %c0_73 = arith.constant 0 : index
    %c0_74 = arith.constant 0 : index
    %62 = vector.load %arg7[%c0_72, %c0_73, %c0_74] : memref<10x10x128xbf16, #tpu.memory_space<vmem>>, vector<8x8x128xbf16>
    %63 = vector.shape_cast %62 : vector<8x8x128xbf16> to vector<64x128xbf16>
    %c0_75 = arith.constant 0 : index
    %c1_76 = arith.constant 1 : index
    %c0_77 = arith.constant 0 : index
    %64 = vector.load %arg7[%c0_75, %c1_76, %c0_77] : memref<10x10x128xbf16, #tpu.memory_space<vmem>>, vector<8x8x128xbf16>
    %65 = vector.shape_cast %64 : vector<8x8x128xbf16> to vector<64x128xbf16>
    %66 = tpu.concatenate %63, %65 in 1 : vector<64x128xbf16>, vector<64x128xbf16> -> vector<64x256xbf16>
    %c0_78 = arith.constant 0 : index
    %c0_79 = arith.constant 0 : index
    %67 = vector.load %arg3[%c0_78, %c0_79] : memref<1152x128xbf16, #tpu.memory_space<vmem>>, vector<256x128xbf16>
    %cst_80 = arith.constant dense<0.000000e+00> : vector<64x128xf32>
    %68 = tpu.matmul %66, %67, %cst_80 {dimension_numbers = #tpu.dot_dimension_numbers<[1], [0], [0], [1], [0, 0, 1, 1], [], []>} : vector<64x256xbf16>, vector<256x128xbf16>, vector<64x128xf32> -> vector<64x128xf32>
    %c0_81 = arith.constant 0 : index
    %c2_82 = arith.constant 2 : index
    %c0_83 = arith.constant 0 : index
    %69 = vector.load %arg7[%c0_81, %c2_82, %c0_83] : memref<10x10x128xbf16, #tpu.memory_space<vmem>>, vector<8x8x128xbf16>
    %70 = vector.shape_cast %69 : vector<8x8x128xbf16> to vector<64x128xbf16>
    %c1_84 = arith.constant 1 : index
    %c0_85 = arith.constant 0 : index
    %c0_86 = arith.constant 0 : index
    %71 = vector.load %arg7[%c1_84, %c0_85, %c0_86] : memref<10x10x128xbf16, #tpu.memory_space<vmem>>, vector<8x8x128xbf16>
    %72 = vector.shape_cast %71 : vector<8x8x128xbf16> to vector<64x128xbf16>
    %73 = tpu.concatenate %70, %72 in 1 : vector<64x128xbf16>, vector<64x128xbf16> -> vector<64x256xbf16>
    %c256_87 = arith.constant 256 : index
    %c0_88 = arith.constant 0 : index
    %74 = vector.load %arg3[%c256_87, %c0_88] : memref<1152x128xbf16, #tpu.memory_space<vmem>>, vector<256x128xbf16>
    %cst_89 = arith.constant dense<0.000000e+00> : vector<64x128xf32>
    %75 = tpu.matmul %73, %74, %cst_89 {dimension_numbers = #tpu.dot_dimension_numbers<[1], [0], [0], [1], [0, 0, 1, 1], [], []>} : vector<64x256xbf16>, vector<256x128xbf16>, vector<64x128xf32> -> vector<64x128xf32>
    %76 = arith.addf %68, %75 : vector<64x128xf32>
    %c1_90 = arith.constant 1 : index
    %c1_91 = arith.constant 1 : index
    %c0_92 = arith.constant 0 : index
    %77 = vector.load %arg7[%c1_90, %c1_91, %c0_92] : memref<10x10x128xbf16, #tpu.memory_space<vmem>>, vector<8x8x128xbf16>
    %78 = vector.shape_cast %77 : vector<8x8x128xbf16> to vector<64x128xbf16>
    %c1_93 = arith.constant 1 : index
    %c2_94 = arith.constant 2 : index
    %c0_95 = arith.constant 0 : index
    %79 = vector.load %arg7[%c1_93, %c2_94, %c0_95] : memref<10x10x128xbf16, #tpu.memory_space<vmem>>, vector<8x8x128xbf16>
    %80 = vector.shape_cast %79 : vector<8x8x128xbf16> to vector<64x128xbf16>
    %81 = tpu.concatenate %78, %80 in 1 : vector<64x128xbf16>, vector<64x128xbf16> -> vector<64x256xbf16>
    %c512_96 = arith.constant 512 : index
    %c0_97 = arith.constant 0 : index
    %82 = vector.load %arg3[%c512_96, %c0_97] : memref<1152x128xbf16, #tpu.memory_space<vmem>>, vector<256x128xbf16>
    %cst_98 = arith.constant dense<0.000000e+00> : vector<64x128xf32>
    %83 = tpu.matmul %81, %82, %cst_98 {dimension_numbers = #tpu.dot_dimension_numbers<[1], [0], [0], [1], [0, 0, 1, 1], [], []>} : vector<64x256xbf16>, vector<256x128xbf16>, vector<64x128xf32> -> vector<64x128xf32>
    %84 = arith.addf %76, %83 : vector<64x128xf32>
    %c2_99 = arith.constant 2 : index
    %c0_100 = arith.constant 0 : index
    %c0_101 = arith.constant 0 : index
    %85 = vector.load %arg7[%c2_99, %c0_100, %c0_101] : memref<10x10x128xbf16, #tpu.memory_space<vmem>>, vector<8x8x128xbf16>
    %86 = vector.shape_cast %85 : vector<8x8x128xbf16> to vector<64x128xbf16>
    %c2_102 = arith.constant 2 : index
    %c1_103 = arith.constant 1 : index
    %c0_104 = arith.constant 0 : index
    %87 = vector.load %arg7[%c2_102, %c1_103, %c0_104] : memref<10x10x128xbf16, #tpu.memory_space<vmem>>, vector<8x8x128xbf16>
    %88 = vector.shape_cast %87 : vector<8x8x128xbf16> to vector<64x128xbf16>
    %89 = tpu.concatenate %86, %88 in 1 : vector<64x128xbf16>, vector<64x128xbf16> -> vector<64x256xbf16>
    %c768_105 = arith.constant 768 : index
    %c0_106 = arith.constant 0 : index
    %90 = vector.load %arg3[%c768_105, %c0_106] : memref<1152x128xbf16, #tpu.memory_space<vmem>>, vector<256x128xbf16>
    %cst_107 = arith.constant dense<0.000000e+00> : vector<64x128xf32>
    %91 = tpu.matmul %89, %90, %cst_107 {dimension_numbers = #tpu.dot_dimension_numbers<[1], [0], [0], [1], [0, 0, 1, 1], [], []>} : vector<64x256xbf16>, vector<256x128xbf16>, vector<64x128xf32> -> vector<64x128xf32>
    %92 = arith.addf %84, %91 : vector<64x128xf32>
    %c2_108 = arith.constant 2 : index
    %c2_109 = arith.constant 2 : index
    %c0_110 = arith.constant 0 : index
    %93 = vector.load %arg7[%c2_108, %c2_109, %c0_110] : memref<10x10x128xbf16, #tpu.memory_space<vmem>>, vector<8x8x128xbf16>
    %94 = vector.shape_cast %93 : vector<8x8x128xbf16> to vector<64x128xbf16>
    %c1024_111 = arith.constant 1024 : index
    %c0_112 = arith.constant 0 : index
    %95 = vector.load %arg3[%c1024_111, %c0_112] : memref<1152x128xbf16, #tpu.memory_space<vmem>>, vector<128x128xbf16>
    %cst_113 = arith.constant dense<0.000000e+00> : vector<64x128xf32>
    %96 = tpu.matmul %94, %95, %cst_113 {dimension_numbers = #tpu.dot_dimension_numbers<[1], [0], [0], [1], [0, 0, 1, 1], [], []>} : vector<64x128xbf16>, vector<128x128xbf16>, vector<64x128xf32> -> vector<64x128xf32>
    %97 = arith.addf %92, %96 : vector<64x128xf32>
    %c2_114 = arith.constant 2 : index
    %c0_115 = arith.constant 0 : index
    %98 = vector.load %arg5[%c2_114, %c0_115] : memref<6x128xf32, #tpu.memory_space<vmem>>, vector<1x128xf32>
    %99 = vector.broadcast %98 : vector<1x128xf32> to vector<64x128xf32>
    %100 = arith.mulf %97, %99 : vector<64x128xf32>
    %c3_116 = arith.constant 3 : index
    %c0_117 = arith.constant 0 : index
    %101 = vector.load %arg5[%c3_116, %c0_117] : memref<6x128xf32, #tpu.memory_space<vmem>>, vector<1x128xf32>
    %102 = vector.broadcast %101 : vector<1x128xf32> to vector<64x128xf32>
    %103 = arith.addf %100, %102 : vector<64x128xf32>
    %c0_118 = arith.constant 0 : index
    %c3_119 = arith.constant 3 : index
    %c0_120 = arith.constant 0 : index
    %c0_121 = arith.constant 0 : index
    %c0_122 = arith.constant 0 : index
    %104 = vector.load %arg1[%c0_118, %c3_119, %c0_120, %c0_121, %c0_122] : memref<1x4x9x9x128xbf16, #tpu.memory_space<vmem>>, vector<1x1x8x8x128xbf16>
    %105 = vector.shape_cast %104 : vector<1x1x8x8x128xbf16> to vector<8x8x128xbf16>
    %106 = vector.shape_cast %105 : vector<8x8x128xbf16> to vector<64x128xbf16>
    %c0_123 = arith.constant 0 : index
    %c0_124 = arith.constant 0 : index
    %107 = vector.load %arg4[%c0_123, %c0_124] : memref<128x128xbf16, #tpu.memory_space<vmem>>, vector<128x128xbf16>
    %cst_125 = arith.constant dense<0.000000e+00> : vector<64x128xf32>
    %108 = tpu.matmul %106, %107, %cst_125 {dimension_numbers = #tpu.dot_dimension_numbers<[1], [0], [0], [1], [0, 0, 1, 1], [], []>} : vector<64x128xbf16>, vector<128x128xbf16>, vector<64x128xf32> -> vector<64x128xf32>
    %c4 = arith.constant 4 : index
    %c0_126 = arith.constant 0 : index
    %109 = vector.load %arg5[%c4, %c0_126] : memref<6x128xf32, #tpu.memory_space<vmem>>, vector<1x128xf32>
    %110 = vector.broadcast %109 : vector<1x128xf32> to vector<64x128xf32>
    %111 = arith.mulf %108, %110 : vector<64x128xf32>
    %c5 = arith.constant 5 : index
    %c0_127 = arith.constant 0 : index
    %112 = vector.load %arg5[%c5, %c0_127] : memref<6x128xf32, #tpu.memory_space<vmem>>, vector<1x128xf32>
    %113 = vector.broadcast %112 : vector<1x128xf32> to vector<64x128xf32>
    %114 = arith.addf %111, %113 : vector<64x128xf32>
    %115 = arith.addf %103, %114 : vector<64x128xf32>
    %cst_128 = arith.constant 0.000000e+00 : f32
    %116 = vector.broadcast %cst_128 : f32 to vector<64x128xf32>
    %117 = arith.maximumf %115, %116 : vector<64x128xf32>
    %118 = vector.shape_cast %117 : vector<64x128xf32> to vector<8x8x128xf32>
    %119 = arith.truncf %118 : vector<8x8x128xf32> to vector<8x8x128xbf16>
    %c0_129 = arith.constant 0 : index
    %c0_130 = arith.constant 0 : index
    %c0_131 = arith.constant 0 : index
    %c0_132 = arith.constant 0 : index
    %120 = vector.load %arg6[%c0_129, %c0_130, %c0_131, %c0_132] : memref<1x8x8x128xbf16, #tpu.memory_space<vmem>>, vector<1x8x8x128xbf16>
    %121 = vector.shape_cast %120 : vector<1x8x8x128xbf16> to vector<8x8x128xbf16>
    %122 = vector.shape_cast %119 : vector<8x8x128xbf16> to vector<1x8x8x128xbf16>
    tpu.vector_store %arg6[%c0_129, %c0_130, %c0_131, %c0_132], %122 {strides = array<i32>} : memref<1x8x8x128xbf16, #tpu.memory_space<vmem>>, vector<1x8x8x128xbf16>,
    return
  }
  func.func @transform_0(%arg0: i32) -> (i32, i32, i32, i32, i32) {
    %c0_i32 = arith.constant 0 : i32
    %c0_i32_0 = arith.constant 0 : i32
    %c0_i32_1 = arith.constant 0 : i32
    %c0_i32_2 = arith.constant 0 : i32
    %c0_i32_3 = arith.constant 0 : i32
    return %arg0, %c0_i32, %c0_i32_0, %c0_i32_1, %c0_i32_2 : i32, i32, i32, i32, i32
  }
  func.func @transform_1(%arg0: i32) -> (i32, i32) {
    %c0_i32 = arith.constant 0 : i32
    %c0_i32_0 = arith.constant 0 : i32
    %c0_i32_1 = arith.constant 0 : i32
    return %c0_i32, %c0_i32_0 : i32, i32
  }
  func.func @transform_2(%arg0: i32) -> (i32, i32) {
    %c0_i32 = arith.constant 0 : i32
    %c0_i32_0 = arith.constant 0 : i32
    %c0_i32_1 = arith.constant 0 : i32
    return %c0_i32, %c0_i32_0 : i32, i32
  }
  func.func @transform_3(%arg0: i32) -> (i32, i32) {
    %c0_i32 = arith.constant 0 : i32
    %c0_i32_0 = arith.constant 0 : i32
    %c0_i32_1 = arith.constant 0 : i32
    return %c0_i32, %c0_i32_0 : i32, i32
  }
  func.func @transform_4(%arg0: i32) -> (i32, i32) {
    %c0_i32 = arith.constant 0 : i32
    %c0_i32_0 = arith.constant 0 : i32
    %c0_i32_1 = arith.constant 0 : i32
    return %c0_i32, %c0_i32_0 : i32, i32
  }
  func.func @transform_5(%arg0: i32) -> (i32, i32, i32, i32) {
    %c0_i32 = arith.constant 0 : i32
    %c0_i32_0 = arith.constant 0 : i32
    %c0_i32_1 = arith.constant 0 : i32
    %c0_i32_2 = arith.constant 0 : i32
    return %arg0, %c0_i32, %c0_i32_0, %c0_i32_1 : i32, i32, i32, i32
  }
}

</mosaic_0001>

<bundles_post_ra>
// kernel: basic_block_forward.1
= control target key start
LH: loop header
LB: loop body
LE: loop exit
PB: predicated region body
PF: predicated region fallthrough
CT: control target
= control target key end

     0   :  { %s5073_s18 = smov 0   ;;  %s6420_s0 = inlined_call_operand.vmem [shape: bf16[2,4,9,9,128], index: 0, kind: input, shape index: {}]   ;;  %s6421_s1 = inlined_call_operand.vmem [shape: bf16[1152,128], index: 1, kind: input, shape index: {}]   ;;  %s6422_s2 = inlined_call_operand.vmem [shape: bf16[1152,128], index: 2, kind: input, shape index: {}]   ;;  %s6423_s3 = inlined_call_operand.vmem [shape: bf16[128,128], index: 3, kind: input, shape index: {}]   ;;  %s6424_s4 = inlined_call_operand.vmem [shape: f32[6,128], index: 4, kind: input, shape index: {}]   ;;  %s6425_s5 = inlined_call_operand.vmem [shape: bf16[2,8,8,128], index: 5, kind: output, shape index: {}]  }
   0x1 LB: > { %s3999_s19 = sadd.s32 4294967295, %s5040_s18   ;;  %p4003_p0 = scmp.ge.s32.totalorder %s5040_s18, 1  ;;  %s5040_s18 = sphi %s5073_s18, %s15_s18  }
   0x2   : > { %p187_p1 = scmp.lt.s32.totalorder %s5040_s18, 3 }
   0x4   : > { %p188_p2 = pnand %p4003_p0, %p187_p1 }
   0x6   : > { %191 = sbr.rel (%p188_p2) target bundleno = 659 (0x293), region = 40 }
   0xb   : > { %v4841_v0 = vld [vmem:[%s6421_s1 + $0xf8] sm:$0xff]   ;;  %v4845_v4 = vld [vmem:[%s6421_s1 + $0xf0] sm:$0xff]   ;;  %v4849_v8 = vld [vmem:[%s6421_s1 + $0xe8] sm:$0xff]   ;;  %p215_p3 = scmp.lt.s32.totalorder %s3999_s19, 1  ;;  %vm331_vm0 = vsmask.f32 3328 }
   0xc   : > { %v4842_v1 = vld [vmem:[%s6421_s1 + $0x78] sm:$0xff]   ;;  %4387 = vmatprep.subr.bf16.mxu0 %v4841_v0  ;;  %v4846_v5 = vld [vmem:[%s6421_s1 + $0x70] sm:$0xff]   ;;  %v4850_v9 = vld [vmem:[%s6421_s1 + $0x68] sm:$0xff]   ;;  %vm332_vm1 = vsmask.f32 7440  ;;  %v6430_v49 = vmov 0 }
   0xd   : > { %v4843_v2 = vld [vmem:[%s6421_s1 + $0xb8] sm:$0xff]   ;;  %4427 = vmatprep.subr.bf16.mxu1 %v4842_v1  ;;  %v4847_v6 = vld [vmem:[%s6421_s1 + $0xb0] sm:$0xff]   ;;  %v4851_v10 = vld [vmem:[%s6421_s1 + $0xa8] sm:$0xff]   ;;  %s6457_s19 = smov (!%p215_p3, %s3999_s19), 1  ;;  %vm1814_vm3 = vcmask 1040384   ;;  %vm1992_vm8 = vcmask 1043456  }
   0xe   : > { %v4844_v3 = vld [vmem:[%s6421_s1 + $0x38] sm:$0xff]   ;;  %4388 = vmatpush3.bf16.msra.mxu0 %v4843_v2  ;;  %v4848_v7 = vld [vmem:[%s6421_s1 + $0x30] sm:$0xff]   ;;  %v4852_v11 = vld [vmem:[%s6421_s1 + $0x28] sm:$0xff]   ;;  %s4831_s30 = smul.u32 288, %s6457_s19  ;;  %vm1815_vm4 = vsmask.f32 256 }
   0xf   : > { %4428 = vmatpush3.bf16.msra.mxu1 %v4844_v3  ;;  %4389 = vmatprep.subr.bf16.mxu0 %v4845_v4  ;;  %v4853_v12 = vld [vmem:[%s6421_s1 + $0xe0] sm:$0xff]   ;;  %v4857_v16 = vld [vmem:[%s6421_s1 + $0xd8] sm:$0xff]   ;;  %v4861_v20 = vld [vmem:[%s6421_s1 + $0xd0] sm:$0xff]   ;;  %vm1847_vm6 = vsmask.f32 7938  ;;  %vm2266_vm10 = vcmask 1042432  }
  0x10   : > { %4429 = vmatprep.subr.bf16.mxu1 %v4846_v5  ;;  %v4854_v13 = vld [vmem:[%s6421_s1 + $0x60] sm:$0xff]   ;;  %v4858_v17 = vld [vmem:[%s6421_s1 + $0x58] sm:$0xff]   ;;  %v4862_v21 = vld [vmem:[%s6421_s1 + $0x50] sm:$0xff]   ;;  %s5187_s16 = scalar_lea.vmem %s6420_s0, %s4831_s30  ;;  %vm2267_vm11 = vcmask 1046532   ;;  %s4355_s28 = sshll.u32 %s6457_s19, 5 }
  0x11   : > { %v4855_v14 = vld [vmem:[%s6421_s1 + $0xa0] sm:$0xff]   ;;  %v4859_v18 = vld [vmem:[%s6421_s1 + $0x98] sm:$0xff]   ;;  %v4863_v22 = vld [vmem:[%s6421_s1 + $0x90] sm:$0xff]   ;;  %s6372_s6 = scalar_lea.vmem %s6425_s5, %s4355_s28 }
  0x12   : > { %4390 = vmatpush3.bf16.msra.mxu0 %v4847_v6  ;;  %v4856_v15 = vld [vmem:[%s6421_s1 + $0x20] sm:$0xff]   ;;  %v4860_v19 = vld [vmem:[%s6421_s1 + $0x18] sm:$0xff]   ;;  %v4864_v23 = vld [vmem:[%s6421_s1 + $0x10] sm:$0xff]  }
  0x13   : > { %4430 = vmatpush3.bf16.msra.mxu1 %v4848_v7  ;;  %4391 = vmatprep.subr.bf16.mxu0 %v4849_v8  ;;  %v4865_v24 = vld [vmem:[%s6421_s1 + $0xc8] sm:$0xff]   ;;  %v4869_v28 = vld [vmem:[%s6421_s1 + $0xc0] sm:$0xff]   ;;  %v4873_v32 = vld [vmem:[%s5187_s16 + $0x90] ss:$8 sps:$4 sm:$0xff]  }
  0x14   : > { %4431 = vmatprep.subr.bf16.mxu1 %v4850_v9  ;;  %v4866_v25 = vld [vmem:[%s6421_s1 + $0x48] sm:$0xff]   ;;  %v4870_v29 = vld [vmem:[%s6421_s1 + $0x40] sm:$0xff]   ;;  %655 = vmatprep.mubr.bf16.mxu0 %v4873_v32  ;;  %v4876_v45 = vld [vmem:[%s6421_s1 + $0x178] sm:$0xff]  }
  0x15   : > { %v4867_v26 = vld [vmem:[%s6421_s1 + $0x88] sm:$0xff]   ;;  %v4871_v30 = vld [vmem:[%s6421_s1 + $0x80] sm:$0xff]   ;;  %vm5198_vm2 = vmor %vm331_vm0, %vm332_vm1 }
  0x16   : > { %4392 = vmatpush3.bf16.msra.mxu0 %v4851_v10  ;;  %v4868_v27 = vld [vmem:[%s6421_s1 + $0x8] sm:$0xff]   ;;  %v4872_v31 = vld [vmem:[%s6421_s1] sm:$0xff]   ;;  %v6431_v49 = vsel %vm5198_vm2, 4294967295, %v6430_v49  ;;  %v4878_v53 = vld [vmem:[%s6421_s1 + $0x1f8] sm:$0xff]  }
  0x17   : > { %4432 = vmatpush3.bf16.msra.mxu1 %v4852_v11  ;;  %4393 = vmatprep.subr.bf16.mxu0 %v4853_v12  ;;  %v4874_v33 = vld [vmem:[%s5187_s16 + $0x48] ss:$8 sps:$4 sm:$0xff]   ;;  %v226_v34 = vld [vmem:[%s5187_s16] sm:$0xf]  ;;  %v323_v36 = vld [vmem:[%s5187_s16 + $0x4] sm:$0x1] }
  0x18   : > { %4433 = vmatprep.subr.bf16.mxu1 %v4854_v13  ;;  %v227_v35 = vld [vmem:[%s5187_s16 + $0x8] sm:$0xf]  ;;  %816 = vmatprep.mubr.bf16.mxu1 %v4874_v33  ;;  %v324_v37 = vld [vmem:[%s5187_s16 + $0xc] sm:$0x1]  ;;  %v335_v39 = vshrl.u32 %v226_v34, 16  ;;  %v338_v40 = vshll.u32 %v226_v34, 16  ;;  %vm5441_vm5 = vmand %vm1814_vm3, %vm1815_vm4 }
  0x19   : > { %v4015_v38 = vcombine.low %v226_v34, %v227_v35  ;;  %v344_v41 = vshll.u32 %v323_v36, 16  ;;  %v349_v42 = vshrl.u32 %v227_v35, 16  ;;  %v352_v43 = vshll.u32 %v227_v35, 16  ;;  %6432 = vst [vmem:[#allocation3_spill] sm:$0xff] %v6431_v49  ;;  %v4879_v56 = vld [vmem:[%s6421_s1 + $0x1b8] sm:$0xff]   ;;  %v4880_v61 = vld [vmem:[%s6421_s1 + $0x170] sm:$0xff]   ;;  %vm5448_vm7 = vmand %vm1814_vm3, %vm1847_vm6 }
  0x1a   : > { %4394 = vmatpush3.bf16.msra.mxu0 %v4855_v14  ;;  %v358_v44 = vshll.u32 %v324_v37, 16  ;;  %v337_v46 = vrot.slane %v335_v39, 4  ;;  %v340_v47 = vrot.slane %v338_v40, 5  ;;  %v4877_v59 = vld [vmem:[%s6421_s1 + $0x138] sm:$0xff]   ;;  %v4882_v62 = vld [vmem:[%s6421_s1 + $0x1f0] sm:$0xff]   ;;  %v4893_v33 = vld [vmem:[%s6421_s1 + $0x1e0] sm:$0xff]  }
  0x1b   : > { %4434 = vmatpush3.bf16.msra.mxu1 %v4856_v15  ;;  %4395 = vmatprep.subr.bf16.mxu0 %v4857_v16  ;;  %v351_v48 = vrot.slane %v349_v42, 4  ;;  %v354_v50 = vrot.slane %v352_v43, 5  ;;  %v346_v52 = vrot.slane %v344_v41, 5  ;;  %v4883_v0 = vld [vmem:[%s5187_s16 + $0xa0] ss:$8 sps:$4 sm:$0xff]   ;;  %v4881_v3 = vld [vmem:[%s6421_s1 + $0x130] sm:$0xff]   ;;  %vm5719_vm9 = vmand %vm1992_vm8, %vm1847_vm6 }
  0x1c   : > { %4435 = vmatprep.subr.bf16.mxu1 %v4858_v17  ;;  %v341_v51 = vor.u32 %v340_v47, %v337_v46  ;;  %v360_v55 = vrot.slane %v358_v44, 5  ;;  %v4884_v2 = vld [vmem:[%s5187_s16 + $0x58] ss:$8 sps:$4 sm:$0xff]   ;;  %v4885_v4 = vld [vmem:[%s6421_s1 + $0x1b0] sm:$0xff]   ;;  %v326_v8 = vld [vmem:[%s5187_s16 + $0x1c] sm:$0x1] }
  0x1d   : > { %v355_v54 = vor.u32 %v354_v50, %v351_v48  ;;  %v228_v5 = vld [vmem:[%s5187_s16 + $0x10] sm:$0xf]  ;;  %v229_v6 = vld [vmem:[%s5187_s16 + $0x18] sm:$0xf]  ;;  %v325_v7 = vld [vmem:[%s5187_s16 + $0x14] sm:$0x1] }
  0x1e   : > { %4396 = vmatpush3.bf16.msra.mxu0 %v4859_v18  ;;  %v342_v57 = vrot.slane %v341_v51, 4  ;;  %v363_v9 = vshrl.u32 %v228_v5, 16  ;;  %v366_v10 = vshll.u32 %v228_v5, 16  ;;  %v372_v11 = vshll.u32 %v325_v7, 16  ;;  %v4887_v16 = vld [vmem:[%s6421_s1 + $0x168] sm:$0xff]   ;;  %v4898_v51 = vld [vmem:[%s6421_s1 + $0x158] sm:$0xff]   ;;  %vm5765_vm12 = vmor %vm2266_vm10, %vm2267_vm11 }
  0x1f   : > { %4436 = vmatpush3.bf16.msra.mxu1 %v4860_v19  ;;  %4397 = vmatprep.subr.bf16.mxu0 %v4861_v20  ;;  %v356_v58 = vrot.slane %v355_v54, 4  ;;  %v377_v12 = vshrl.u32 %v229_v6, 16  ;;  %v380_v13 = vshll.u32 %v229_v6, 16  ;;  %v386_v14 = vshll.u32 %v326_v8, 16  ;;  %v4894_v35 = vld [vmem:[%s5187_s16 + $0xb0] ss:$8 sps:$4 sm:$0xff]  }
  0x20   : > { %4437 = vmatprep.subr.bf16.mxu1 %v4862_v21  ;;  %v347_v60 = vsel %vm5198_vm2, %v342_v57, %v346_v52  ;;  %v4016_v15 = vcombine.low %v228_v5, %v229_v6  ;;  %v365_v17 = vrot.slane %v363_v9, 4  ;;  %v368_v18 = vrot.slane %v366_v10, 5  ;;  %v4888_v21 = vld [vmem:[%s6421_s1 + $0x128] sm:$0xff]   ;;  %v230_v39 = vld [vmem:[%s5187_s16 + $0x20] sm:$0xf]  ;;  %v4899_v52 = vld [vmem:[%s6421_s1 + $0x118] sm:$0xff]  }
  0x21   : > { %v361_v63 = vsel %vm5198_vm2, %v356_v58, %v360_v55  ;;  %v379_v19 = vrot.slane %v377_v12, 4  ;;  %v382_v20 = vrot.slane %v380_v13, 5  ;;  %v4895_v37 = vld [vmem:[%s5187_s16 + $0x68] ss:$8 sps:$4 sm:$0xff]   ;;  %v327_v41 = vld [vmem:[%s5187_s16 + $0x24] sm:$0x1] }
  0x22   : > { %4398 = vmatpush3.bf16.msra.mxu0 %v4863_v22  ;;  %v4031_v1 = vcombine.low %v347_v60, %v361_v63  ;;  %v369_v22 = vor.u32 %v368_v18, %v365_v17  ;;  %v231_v40 = vld [vmem:[%s5187_s16 + $0x28] sm:$0xf]  ;;  %v328_v42 = vld [vmem:[%s5187_s16 + $0x2c] sm:$0x1]  ;;  %v391_v43 = vshrl.u32 %v230_v39, 16  ;;  %v394_v44 = vshll.u32 %v230_v39, 16 }
  0x23   : > { %4438 = vmatpush3.bf16.msra.mxu1 %v4864_v23  ;;  %4399 = vmatprep.subr.bf16.mxu0 %v4865_v24  ;;  %v374_v23 = vrot.slane %v372_v11, 5  ;;  %v4889_v24 = vld [vmem:[%s6421_s1 + $0x1e8] sm:$0xff]   ;;  %v405_v46 = vshrl.u32 %v231_v40, 16  ;;  %v408_v47 = vshll.u32 %v231_v40, 16  ;;  %v414_v48 = vshll.u32 %v328_v42, 16  ;;  %v4907_v9 = vld [vmem:[%s6421_s1 + $0x190] sm:$0xff]  }
  0x24   : > { %4439 = vmatprep.subr.bf16.mxu1 %v4866_v25  ;;  %v383_v25 = vor.u32 %v382_v20, %v379_v19  ;;  %v4017_v50 = vcombine.low %v230_v39, %v231_v40  ;;  %v396_v54 = vrot.slane %v394_v44, 5  ;;  %v4905_v6 = vld [vmem:[%s5187_s16 + $0xc0] ss:$8 sps:$4 sm:$0xff]   ;;  %v232_v10 = vld [vmem:[%s5187_s16 + $0x30] sm:$0xf] }
  0x25   : > { %v407_v55 = vrot.slane %v405_v46, 4  ;;  %v4906_v8 = vld [vmem:[%s5187_s16 + $0x78] ss:$8 sps:$4 sm:$0xff]   ;;  %v329_v12 = vld [vmem:[%s5187_s16 + $0x34] sm:$0x1] }
  0x26   : > { %4400 = vmatpush3.bf16.msra.mxu0 %v4867_v26  ;;  %v388_v26 = vrot.slane %v386_v14, 5  ;;  %v233_v11 = vld [vmem:[%s5187_s16 + $0x38] sm:$0xf]  ;;  %v330_v13 = vld [vmem:[%s5187_s16 + $0x3c] sm:$0x1]  ;;  %v419_v14 = vshrl.u32 %v232_v10, 16 }
  0x27   : > { %4440 = vmatpush3.bf16.msra.mxu1 %v4868_v27  ;;  %4401 = vmatprep.subr.bf16.mxu0 %v4869_v28  ;;  %v4890_v27 = vld [vmem:[%s6421_s1 + $0x1a8] sm:$0xff]   ;;  %v370_v28 = vrot.slane %v369_v22, 4  ;;  %v433_v17 = vshrl.u32 %v233_v11, 16  ;;  %v436_v18 = vshll.u32 %v233_v11, 16  ;;  %v442_v19 = vshll.u32 %v330_v13, 16 }
  0x28   : > { %4441 = vmatprep.subr.bf16.mxu1 %v4870_v29  ;;  %v4891_v29 = vld [vmem:[%s6421_s1 + $0x160] sm:$0xff]   ;;  %v4018_v20 = vcombine.low %v232_v10, %v233_v11  ;;  %v4910_v22 = vld [vmem:[%s6421_s1 + $0x108] sm:$0xff]   ;;  %v4079_v39 = vld [vmem:[%s5187_s16 + $0x90] sm:$0xf] }
  0x29   : > { %v375_v32 = vsel %vm5198_vm2, %v370_v28, %v374_v23  ;;  %v421_v23 = vrot.slane %v419_v14, 4  ;;  %v4081_v42 = vld [vmem:[%s5187_s16 + $0x98] sm:$0xf]  ;;  %v878_v46 = vshll.u32 %v4079_v39, 16 }
  0x2a   : > { %4402 = vmatpush3.bf16.msra.mxu0 %v4871_v30  ;;  %v384_v30 = vrot.slane %v383_v25, 4  ;;  %v435_v25 = vrot.slane %v433_v17, 4 }
  0x2b   : > { %4442 = vmatpush3.bf16.msra.mxu1 %v4872_v31  ;;  %4467 = vmatprep.subr.bf16.mxu0 %v4876_v45  ;;  %v4892_v31 = vld [vmem:[%s6421_s1 + $0x120] sm:$0xff]   ;;  %v400_v45 = vshll.u32 %v327_v41, 16  ;;  %v4080_v41 = vld [vmem:[%s5187_s16 + $0x94] sm:$0x1] }
  0x2c   : > { %4507 = vmatprep.subr.bf16.mxu1 %v4878_v53  ;;  %v389_v34 = vsel %vm5198_vm2, %v384_v30, %v388_v26  ;;  %v393_v53 = vrot.slane %v391_v43, 4  ;;  %v438_v26 = vrot.slane %v436_v18, 5  ;;  %v4082_v43 = vld [vmem:[%s5187_s16 + $0x9c] sm:$0x1] }
  0x2d   : > { %656 = vmatmul.mubr.bf16.vlgmr.msra.gmra.mxu0 %v4031_v1  ;;  %v4032_v36 = vcombine.low %v375_v32, %v389_v34  ;;  %v402_v58 = vrot.slane %v400_v45, 5  ;;  %v4912_v32 = vld [vmem:[%s6421_s1 + $0x188] sm:$0xff]   ;;  %v4913_v34 = vld [vmem:[%s6421_s1 + $0x140] sm:$0xff]   ;;  %v875_v45 = vshrl.u32 %v4079_v39, 16 }
  0x2e   : > { %817 = vmatmul.mubr.bf16.vlgmr.msra.gmra.mxu1 %v4015_v38  ;;  %4468 = vmatpush3.bf16.msra.mxu0 %v4877_v59  ;;  %v4896_v38 = vld [vmem:[%s6421_s1 + $0x1a0] sm:$0xff]   ;;  %v397_v57 = vor.u32 %v396_v54, %v393_v53  ;;  %v4900_v59 = vld [vmem:[%s6421_s1 + $0x1d8] sm:$0xff]   ;;  %v439_v30 = vor.u32 %v438_v26, %v435_v25 }
  0x2f   : > { %4508 = vmatpush3.bf16.msra.mxu1 %v4879_v56  ;;  %824 = vmatprep.mubr.bf16.mxu1 %v4884_v2  ;;  %v410_v56 = vrot.slane %v408_v47, 5  ;;  %v4903_v2 = vld [vmem:[%s6421_s1 + $0x110] sm:$0xff]   ;;  %v884_v47 = vshll.u32 %v4080_v41, 16  ;;  %v4918_v53 = vld [vmem:[%s6421_s1 + $0x238] sm:$0xff]   ;;  %v877_v54 = vrot.slane %v875_v45, 4 }
  0x30   : > { %4509 = vmatprep.subr.bf16.mxu1 %v4882_v62  ;;  %663 = vmatprep.mubr.bf16.mxu0 %v4883_v0  ;;  %v4901_v62 = vld [vmem:[%s6421_s1 + $0x198] sm:$0xff]   ;;  %v398_v63 = vrot.slane %v397_v57, 4  ;;  %v4902_v0 = vld [vmem:[%s6421_s1 + $0x150] sm:$0xff]   ;;  %v4924_v25 = vld [vmem:[%s5187_s16 + $0x60] ss:$8 sps:$4 sm:$0xff]  }
  0x31   : > { %4469 = vmatprep.subr.bf16.mxu0 %v4880_v61  ;;  %v411_v60 = vor.u32 %v410_v56, %v407_v55  ;;  %v416_v61 = vrot.slane %v414_v48, 5  ;;  %v4916_v48 = vld [vmem:[%s6421_s1 + $0x180] sm:$0xff]   ;;  %v880_v55 = vrot.slane %v878_v46, 5 }
  0x32   : > { %4470 = vmatpush3.bf16.msra.mxu0 %v4881_v3  ;;  %v403_v3 = vsel %vm5198_vm2, %v398_v63, %v402_v58 }
  0x33   : > { %4510 = vmatpush3.bf16.msra.mxu1 %v4885_v4  ;;  %4471 = vmatprep.subr.bf16.mxu0 %v4887_v16  ;;  %v412_v1 = vrot.slane %v411_v60, 4  ;;  %v4904_v4 = vld [vmem:[%s6421_s1 + $0x1d0] sm:$0xff]   ;;  %v428_v16 = vshll.u32 %v329_v12, 16  ;;  %v881_v58 = vor.u32 %v880_v55, %v877_v54 }
  0x34   : > { %4511 = vmatprep.subr.bf16.mxu1 %v4889_v24  ;;  %v4929_v54 = vld [vmem:[%s5187_s16 + $0x70] ss:$8 sps:$4 sm:$0xff]  }
  0x35   : > { %664 = vmatmul.mubr.bf16.gmra.mxu0 %v4032_v36  ;;  %v417_v5 = vsel %vm5198_vm2, %v412_v1, %v416_v61  ;;  %v430_v28 = vrot.slane %v428_v16, 5  ;;  %v4914_v36 = vld [vmem:[%s6421_s1 + $0x100] sm:$0xff]   ;;  %v882_v63 = vrot.slane %v881_v58, 4 }
  0x36   : > { %825 = vmatmul.mubr.bf16.gmra.mxu1 %v4016_v15  ;;  %4472 = vmatpush3.bf16.msra.mxu0 %v4888_v21  ;;  %v4033_v7 = vcombine.low %v403_v3, %v417_v5  ;;  %v422_v15 = vshll.u32 %v232_v10, 16  ;;  %v4909_v21 = vld [vmem:[%s6421_s1 + $0x148] sm:$0xff]   ;;  %v4917_v1 = vld [vmem:[%s5187_s16 + $0xd8] ss:$8 sps:$4 sm:$0xff]   ;;  %v4084_v5 = vld [vmem:[%s5187_s16 + $0xa4] sm:$0x1] }
  0x37   : > { %4512 = vmatpush3.bf16.msra.mxu1 %v4890_v27  ;;  %4473 = vmatprep.subr.bf16.mxu0 %v4891_v29  ;;  %v4911_v29 = vld [vmem:[%s6421_s1 + $0x1c8] sm:$0xff]   ;;  %v912_v12 = vshll.u32 %v4084_v5, 16  ;;  %v4927_v58 = vld [vmem:[%s5187_s16 + $0xf8] ss:$8 sps:$4 sm:$0xff]  }
  0x38   : > { %4513 = vmatprep.subr.bf16.mxu1 %v4893_v33  ;;  %832 = vmatprep.mubr.bf16.mxu1 %v4895_v37  ;;  %v424_v24 = vrot.slane %v422_v15, 5  ;;  %v4921_v15 = vld [vmem:[%s6421_s1 + $0x230] sm:$0xff]  }
  0x39   : > { %671 = vmatprep.mubr.bf16.mxu0 %v4894_v35  ;;  %v440_v35 = vrot.slane %v439_v30, 4  ;;  %v4925_v30 = vld [vmem:[%s5187_s16 + $0x18] ss:$8 sps:$4 sm:$0xff]  }
  0x3a   : > { %4474 = vmatpush3.bf16.msra.mxu0 %v4892_v31  ;;  %v425_v27 = vor.u32 %v424_v24, %v421_v23  ;;  %v444_v31 = vrot.slane %v442_v19, 5 }
  0x3b   : > { %4514 = vmatpush3.bf16.msra.mxu1 %v4896_v38  ;;  %4475 = vmatprep.subr.bf16.mxu0 %v4898_v51  ;;  %v4915_v38 = vld [vmem:[%s6421_s1 + $0x1c0] sm:$0xff]   ;;  %v892_v51 = vshll.u32 %v4081_v42, 16 }
  0x3c   : > { %4515 = vmatprep.subr.bf16.mxu1 %v4900_v59  ;;  %v426_v33 = vrot.slane %v425_v27, 4  ;;  %v445_v40 = vsel %vm5198_vm2, %v440_v35, %v444_v31  ;;  %v886_v59 = vrot.slane %v884_v47, 5  ;;  %v4923_v27 = vld [vmem:[%s6421_s1 + $0x228] sm:$0xff]   ;;  %v4089_v35 = vld [vmem:[%s5187_s16 + $0xb8] sm:$0xf] }
  0x3d   : > { %672 = vmatmul.mubr.bf16.gmra.mxu0 %v4033_v7  ;;  %v894_v57 = vrot.slane %v892_v51, 5  ;;  %v4085_v7 = vld [vmem:[%s5187_s16 + $0xa8] sm:$0xf]  ;;  %v945_v41 = vshrl.u32 %v4089_v35, 16 }
  0x3e   : > { %833 = vmatmul.mubr.bf16.gmra.mxu1 %v4017_v50  ;;  %4476 = vmatpush3.bf16.msra.mxu0 %v4899_v52  ;;  %v431_v37 = vsel %vm5198_vm2, %v426_v33, %v430_v28  ;;  %v889_v50 = vshrl.u32 %v4081_v42, 16  ;;  %v898_v52 = vshll.u32 %v4082_v43, 16  ;;  %v887_v3 = vsel %vm5198_vm2, %v882_v63, %v886_v59  ;;  %v4088_v33 = vld [vmem:[%s5187_s16 + $0xb4] sm:$0x1]  ;;  %v4926_v43 = vld [vmem:[%s6421_s1 + $0x220] sm:$0xff]  }
  0x3f   : > { %4516 = vmatpush3.bf16.msra.mxu1 %v4901_v62  ;;  %4477 = vmatprep.subr.bf16.mxu0 %v4902_v0  ;;  %v4034_v44 = vcombine.low %v431_v37, %v445_v40  ;;  %v4919_v62 = vld [vmem:[%s5187_s16 + $0x50] ss:$8 sps:$4 sm:$0xff]   ;;  %v917_v13 = vshrl.u32 %v4085_v7, 16  ;;  %v920_v14 = vshll.u32 %v4085_v7, 16  ;;  %v940_v40 = vshll.u32 %v4088_v33, 16  ;;  %v4936_v33 = vld [vmem:[%s6421_s1 + $0x200] sm:$0xff]  }
  0x40   : > { %4517 = vmatprep.subr.bf16.mxu1 %v4904_v4  ;;  %840 = vmatprep.mubr.bf16.mxu1 %v4906_v8  ;;  %v891_v56 = vrot.slane %v889_v50, 4  ;;  %v900_v60 = vrot.slane %v898_v52, 5  ;;  %v4083_v4 = vld [vmem:[%s5187_s16 + $0xa0] sm:$0xf]  ;;  %v4086_v8 = vld [vmem:[%s5187_s16 + $0xac] sm:$0x1] }
  0x41   : > { %679 = vmatprep.mubr.bf16.mxu0 %v4905_v6  ;;  %v906_v10 = vshll.u32 %v4083_v4, 16  ;;  %v926_v18 = vshll.u32 %v4086_v8, 16  ;;  %v919_v19 = vrot.slane %v917_v13, 4  ;;  %v948_v42 = vshll.u32 %v4089_v35, 16  ;;  %v4930_v59 = vld [vmem:[%s5187_s16 + $0x28] ss:$8 sps:$4 sm:$0xff]  }
  0x42   : > { %4478 = vmatpush3.bf16.msra.mxu0 %v4903_v2  ;;  %v895_v61 = vor.u32 %v894_v57, %v891_v56  ;;  %v4920_v2 = vld [vmem:[%s5187_s16 + $0x8] ss:$8 sps:$4 sm:$0xff]   ;;  %v947_v47 = vrot.slane %v945_v41, 4  ;;  %v942_v51 = vrot.slane %v940_v40, 5  ;;  %v4928_v56 = vld [vmem:[%s6421_s1 + $0x218] sm:$0xff]  }
  0x43   : > { %4518 = vmatpush3.bf16.msra.mxu1 %v4907_v9  ;;  %4479 = vmatprep.subr.bf16.mxu0 %v4909_v21  ;;  %v903_v9 = vshrl.u32 %v4083_v4, 16  ;;  %v908_v17 = vrot.slane %v906_v10, 5  ;;  %v928_v23 = vrot.slane %v926_v18, 5  ;;  %v4931_v8 = vld [vmem:[%s6421_s1 + $0x210] sm:$0xff]   ;;  %v4934_v18 = vld [vmem:[%s5187_s16 + $0x80] ss:$8 sps:$4 sm:$0xff]  }
  0x44   : > { %4519 = vmatprep.subr.bf16.mxu1 %v4911_v29  ;;  %v896_v0 = vrot.slane %v895_v61, 4  ;;  %v4922_v29 = vld [vmem:[%s5187_s16 + $0xe8] ss:$8 sps:$4 sm:$0xff]   ;;  %v4091_v61 = vld [vmem:[%s5187_s16 + $0xc0] sm:$0xf] }
  0x45   : > { %680 = vmatmul.mubr.bf16.gmra.mxu0 %v4034_v44  ;;  %v905_v16 = vrot.slane %v903_v9, 4  ;;  %v4164_v41 = vld [vmem:[%s5187_s16 + $0x1c] sm:$0x1] }
  0x46   : > { %841 = vmatmul.mubr.bf16.gmra.mxu1 %v4018_v20  ;;  %4480 = vmatpush3.bf16.msra.mxu0 %v4910_v22  ;;  %v901_v6 = vsel %vm5198_vm2, %v896_v0, %v900_v60  ;;  %v922_v20 = vrot.slane %v920_v14, 5  ;;  %v914_v22 = vrot.slane %v912_v12, 5  ;;  %v4093_v0 = vld [vmem:[%s5187_s16 + $0xc8] sm:$0xf] }
  0x47   : > { %4520 = vmatpush3.bf16.msra.mxu1 %v4912_v32  ;;  %4481 = vmatprep.subr.bf16.mxu0 %v4913_v34  ;;  %v4099_v11 = vcombine.low %v887_v3, %v901_v6  ;;  %v909_v21 = vor.u32 %v908_v17, %v905_v16  ;;  %v4087_v32 = vld [vmem:[%s5187_s16 + $0xb0] sm:$0xf]  ;;  %v962_v3 = vshll.u32 %v4091_v61, 16  ;;  %v973_v6 = vshrl.u32 %v4093_v0, 16 }
  0x48   : > { %4521 = vmatprep.subr.bf16.mxu1 %v4915_v38  ;;  %1453 = vmatprep.mubr.bf16.mxu1 %v4919_v62  ;;  %v923_v24 = vor.u32 %v922_v20, %v919_v19  ;;  %v931_v37 = vshrl.u32 %v4087_v32, 16  ;;  %v934_v38 = vshll.u32 %v4087_v32, 16  ;;  %v4092_v62 = vld [vmem:[%s5187_s16 + $0xc4] sm:$0x1]  ;;  %v976_v7 = vshll.u32 %v4093_v0, 16  ;;  %v4933_v20 = vld [vmem:[%s6421_s1 + $0x208] sm:$0xff]  }
  0x49   : > { %1186 = vmatprep.mubr.bf16.mxu0 %v4099_v11  ;;  %v910_v26 = vrot.slane %v909_v21, 4  ;;  %v968_v5 = vshll.u32 %v4092_v62, 16  ;;  %v964_v10 = vrot.slane %v962_v3, 5  ;;  %v975_v12 = vrot.slane %v973_v6, 4  ;;  %v4168_v62 = vld [vmem:[%s5187_s16 + $0x2c] sm:$0x1] }
  0x4a   : > { %4482 = vmatpush3.bf16.msra.mxu0 %v4914_v36  ;;  %v924_v28 = vrot.slane %v923_v24, 4  ;;  %v4090_v36 = vld [vmem:[%s5187_s16 + $0xbc] sm:$0x1]  ;;  %v933_v44 = vrot.slane %v931_v37, 4  ;;  %v936_v45 = vrot.slane %v934_v38, 5  ;;  %v978_v13 = vrot.slane %v976_v7, 5 }
  0x4b   : > { %4522 = vmatpush3.bf16.msra.mxu1 %v4916_v48  ;;  %4743 = vmatprep.subr.bf16.mxu0 %v4918_v53  ;;  %v915_v31 = vsel %vm5198_vm2, %v910_v26, %v914_v22  ;;  %v954_v46 = vshll.u32 %v4090_v36, 16  ;;  %v950_v48 = vrot.slane %v948_v42, 5  ;;  %v4932_v22 = vld [vmem:[%s5187_s16 + $0x108] ss:$8 sps:$4 sm:$0xff]   ;;  %v4160_v26 = vld [vmem:[%s5187_s16 + $0xc] sm:$0x1] }
  0x4c   : > { %v929_v34 = vsel %vm5198_vm2, %v924_v28, %v928_v23  ;;  %v937_v50 = vor.u32 %v936_v45, %v933_v44  ;;  %v979_v17 = vor.u32 %v978_v13, %v975_v12  ;;  %v4935_v23 = vld [vmem:[%s5187_s16 + $0x38] ss:$8 sps:$4 sm:$0xff]   ;;  %v4161_v28 = vld [vmem:[%s5187_s16 + $0x10] sm:$0xf]  ;;  %v4170_v7 = vld [vmem:[%s5187_s16 + $0x34] sm:$0x1] }
  0x4d   : > { %1187 = vmatmul.mubr.bf16.vlgmr.msra.gmra.mxu0 %v4917_v1  ;;  %v4100_v39 = vcombine.low %v915_v31, %v929_v34  ;;  %v956_v52 = vrot.slane %v954_v46, 5  ;;  %v4094_v1 = vld [vmem:[%s5187_s16 + $0xcc] sm:$0x1]  ;;  %v1520_v34 = vshll.u32 %v4160_v26, 16  ;;  %v1525_v35 = vshrl.u32 %v4161_v28, 16 }
  0x4e   : > { %1454 = vmatmul.mubr.bf16.vlgmr.msra.gmra.mxu1 %v4920_v2  ;;  %4744 = vmatpush3.bf16.msra.mxu0 %v4918_v53  ;;  %v951_v53 = vor.u32 %v950_v48, %v947_v47  ;;  %v938_v55 = vrot.slane %v937_v50, 4  ;;  %v959_v2 = vshrl.u32 %v4091_v61, 16  ;;  %v982_v11 = vshll.u32 %v4094_v1, 16  ;;  %v4163_v37 = vld [vmem:[%s5187_s16 + $0x18] sm:$0xf] }
  0x4f   : > { %4745 = vmatprep.subr.bf16.mxu0 %v4921_v15  ;;  %1461 = vmatprep.mubr.bf16.mxu1 %v4924_v25  ;;  %v980_v21 = vrot.slane %v979_v17, 4  ;;  %v4159_v25 = vld [vmem:[%s5187_s16 + $0x8] sm:$0xf]  ;;  %v1528_v36 = vshll.u32 %v4161_v28, 16  ;;  %v1539_v42 = vshrl.u32 %v4163_v37, 16  ;;  %v1527_v44 = vrot.slane %v1525_v35, 4 }
  0x50   : > { %1194 = vmatprep.mubr.bf16.mxu0 %v4100_v39  ;;  %v952_v57 = vrot.slane %v951_v53, 4  ;;  %v943_v60 = vsel %vm5198_vm2, %v938_v55, %v942_v51  ;;  %v961_v9 = vrot.slane %v959_v2, 4  ;;  %v984_v16 = vrot.slane %v982_v11, 5  ;;  %v4165_v46 = vld [vmem:[%s5187_s16 + $0x20] sm:$0xf] }
  0x51   : > { %v1514_v31 = vshll.u32 %v4159_v25, 16  ;;  %v1530_v45 = vrot.slane %v1528_v36, 5  ;;  %v1542_v47 = vshll.u32 %v4163_v37, 16  ;;  %v4166_v51 = vld [vmem:[%s5187_s16 + $0x24] sm:$0x1]  ;;  %v1548_v53 = vshll.u32 %v4164_v41, 16 }
  0x52   : > { %4746 = vmatpush3.bf16.msra.mxu0 %v4921_v15  ;;  %v957_v63 = vsel %vm5198_vm2, %v952_v57, %v956_v52  ;;  %v965_v14 = vor.u32 %v964_v10, %v961_v9  ;;  %v970_v15 = vrot.slane %v968_v5, 5  ;;  %v1541_v52 = vrot.slane %v1539_v42, 4 }
  0x53   : > { %4747 = vmatprep.subr.bf16.mxu0 %v4923_v27  ;;  %v4101_v4 = vcombine.low %v943_v60, %v957_v63  ;;  %v1516_v39 = vrot.slane %v1514_v31, 5  ;;  %v1544_v55 = vrot.slane %v1542_v47, 5  ;;  %v1556_v57 = vshll.u32 %v4165_v46, 16 }
  0x54   : > { %v966_v19 = vrot.slane %v965_v14, 4  ;;  %v1550_v60 = vrot.slane %v1548_v53, 5  ;;  %v1562_v61 = vshll.u32 %v4166_v51, 16  ;;  %v1576_v13 = vshll.u32 %v4168_v62, 16  ;;  %v4171_v14 = vld [vmem:[%s5187_s16 + $0x38] sm:$0xf] }
  0x55   : > { %1195 = vmatmul.mubr.bf16.gmra.mxu0 %v4922_v29  ;;  %v4162_v29 = vld [vmem:[%s5187_s16 + $0x14] sm:$0x1]  ;;  %v1545_v1 = vor.u32 %v1544_v55, %v1541_v52  ;;  %v1558_v3 = vrot.slane %v1556_v57, 5  ;;  %v1826_v62 = vld [vmem:[#allocation2 + $0x18] sm:$0x1] }
  0x56   : > { %1462 = vmatmul.mubr.bf16.gmra.mxu1 %v4925_v30  ;;  %4748 = vmatpush3.bf16.msra.mxu0 %v4923_v27  ;;  %v971_v24 = vsel %vm5198_vm2, %v966_v19, %v970_v15  ;;  %v985_v27 = vsel %vm5198_vm2, %v980_v21, %v984_v16  ;;  %v1511_v30 = vshrl.u32 %v4159_v25, 16  ;;  %v1534_v40 = vshll.u32 %v4162_v29, 16  ;;  %v4172_v15 = vld [vmem:[%s5187_s16 + $0x3c] sm:$0x1]  ;;  %v4174_v25 = vld [vmem:[%s5187_s16 + $0x44] sm:$0x1] }
  0x57   : > { %4749 = vmatprep.subr.bf16.mxu0 %v4926_v43  ;;  %1469 = vmatprep.mubr.bf16.mxu1 %v4929_v54  ;;  %v4102_v32 = vcombine.low %v971_v24, %v985_v27  ;;  %v1531_v54 = vor.u32 %v1530_v45, %v1527_v44  ;;  %v1564_v6 = vrot.slane %v1562_v61, 5  ;;  %v1546_v11 = vrot.slane %v1545_v1, 4  ;;  %v4940_v61 = vld [vmem:[%s6422_s2 + $0xb0] sm:$0xff]  }
  0x58   : > { %1202 = vmatprep.mubr.bf16.mxu0 %v4101_v4  ;;  %v1513_v38 = vrot.slane %v1511_v30, 4  ;;  %v1536_v50 = vrot.slane %v1534_v40, 5  ;;  %v4169_v4 = vld [vmem:[%s5187_s16 + $0x30] sm:$0xf]  ;;  %v1590_v24 = vshll.u32 %v4170_v7, 16  ;;  %v1595_v29 = vshrl.u32 %v4171_v14, 16 }
  0x59   : > { %v1532_v0 = vrot.slane %v1531_v54, 4  ;;  %v1584_v19 = vshll.u32 %v4169_v4, 16  ;;  %v1551_v21 = vsel %vm5198_vm2, %v1546_v11, %v1550_v60  ;;  %v1618_v44 = vshll.u32 %v4174_v25, 16  ;;  %v4939_v60 = vld [vmem:[%s6422_s2 + $0xf0] sm:$0xff]   ;;  %v4942_v7 = vld [vmem:[%s6422_s2 + $0x38] sm:$0xff]   ;;  %v4944_v11 = vld [vmem:[%s6422_s2 + $0xa8] sm:$0xff]  }
  0x5a   : > { %4750 = vmatpush3.bf16.msra.mxu0 %v4926_v43  ;;  %v1522_v43 = vrot.slane %v1520_v34, 5  ;;  %v1517_v48 = vor.u32 %v1516_v39, %v1513_v38  ;;  %v1592_v31 = vrot.slane %v1590_v24, 5  ;;  %v1597_v37 = vrot.slane %v1595_v29, 4  ;;  %v1832_v29 = vld [vmem:[#allocation2 + $0x28] sm:$0x1] }
  0x5b   : > { %4751 = vmatprep.subr.bf16.mxu0 %v4928_v56  ;;  %v1537_v10 = vsel %vm5198_vm2, %v1532_v0, %v1536_v50  ;;  %v1586_v28 = vrot.slane %v1584_v19, 5  ;;  %v1620_v53 = vrot.slane %v1618_v44, 5  ;;  %v1858_v0 = vld [vmem:[#allocation2 + $0x1c] sm:$0x1]  ;;  %v1827_v1 = vsel %vm5441_vm5, 0, %v1826_v62  ;;  %v4963_v62 = vld [vmem:[%s6422_s2 + $0xc0] sm:$0xff]  }
  0x5c   : > { %1828 = vst [vmem:[#allocation2 + $0x18] sm:$0x1] %v1827_v1  ;;  %v4964_v1 = vld [vmem:[%s6422_s2 + $0x80] sm:$0xff]  }
  0x5d   : > { %1203 = vmatmul.mubr.bf16.gmra.mxu0 %v4927_v58  ;;  %v4167_v58 = vld [vmem:[%s5187_s16 + $0x28] sm:$0xf] }
  0x5e   : > { %1470 = vmatmul.mubr.bf16.gmra.mxu1 %v4930_v59  ;;  %4752 = vmatpush3.bf16.msra.mxu0 %v4928_v56  ;;  %v1553_v56 = vshrl.u32 %v4165_v46, 16  ;;  %v1518_v59 = vrot.slane %v1517_v48, 4  ;;  %v1567_v63 = vshrl.u32 %v4167_v58, 16  ;;  %v1570_v9 = vshll.u32 %v4167_v58, 16  ;;  %v4937_v58 = vld [vmem:[%s6422_s2 + $0xf8] sm:$0xff]  }
  0x5f   : > { %4753 = vmatprep.subr.bf16.mxu0 %v4931_v8  ;;  %1477 = vmatprep.mubr.bf16.mxu1 %v4934_v18  ;;  %v1581_v18 = vshrl.u32 %v4169_v4, 16  ;;  %v4941_v4 = vld [vmem:[%s6422_s2 + $0x78] sm:$0xff]  }
  0x60   : > { %1210 = vmatprep.mubr.bf16.mxu0 %v4102_v32  ;;  %v1555_v2 = vrot.slane %v1553_v56, 4  ;;  %v1523_v5 = vsel %vm5198_vm2, %v1518_v59, %v1522_v43  ;;  %v1572_v17 = vrot.slane %v1570_v9, 5  ;;  %v1598_v32 = vshll.u32 %v4171_v14, 16  ;;  %v4938_v59 = vld [vmem:[%s6422_s2 + $0xb8] sm:$0xff]   ;;  %4559 = vmatprep.subr.bf16.mxu1 %v4937_v58  ;;  %v4959_v58 = vld [vmem:[%s6422_s2 + $0xc8] sm:$0xff]  }
  0x61   : > { %v4175_v16 = vcombine.low %v1523_v5, %v1537_v10  ;;  %v1583_v27 = vrot.slane %v1581_v18, 4  ;;  %4560 = vmatpush3.bf16.msra.mxu1 %v4938_v59  ;;  %v1820_v5 = vld [vmem:[#allocation2 + $0x8] sm:$0x1] }
  0x62   : > { %4754 = vmatpush3.bf16.msra.mxu0 %v4931_v8  ;;  %v1569_v8 = vrot.slane %v1567_v63, 4  ;;  %v1559_v12 = vor.u32 %v1558_v3, %v1555_v2  ;;  %v1600_v38 = vrot.slane %v1598_v32, 5  ;;  %4561 = vmatprep.subr.bf16.mxu1 %v4939_v60  ;;  %v6433_v63 = vmov 0  ;;  %v4943_v10 = vld [vmem:[%s6422_s2 + $0xe8] sm:$0xff]   ;;  %v4961_v60 = vld [vmem:[%s6422_s2 + $0x50] sm:$0xff]  }
  0x63   : > { %4755 = vmatprep.subr.bf16.mxu0 %v4933_v20  ;;  %v1587_v36 = vor.u32 %v1586_v28, %v1583_v27  ;;  %v6434_v63 = vsel %vm5441_vm5, 4294967295, %v6433_v63  ;;  %v1859_v3 = vsel %vm5448_vm7, 0, %v1858_v0  ;;  %v4947_v27 = vld [vmem:[%s6422_s2 + $0xe0] sm:$0xff]   ;;  %v1833_v32 = vsel %vm5441_vm5, 0, %v1832_v29  ;;  %v4960_v59 = vld [vmem:[%s6422_s2 + $0x88] sm:$0xff]  }
  0x64   : > { %v1573_v26 = vor.u32 %v1572_v17, %v1569_v8  ;;  %v1601_v45 = vor.u32 %v1600_v38, %v1597_v37  ;;  %6435 = vst [vmem:[#allocation4_spill] sm:$0xff] %v6434_v63  ;;  %1860 = vst [vmem:[#allocation2 + $0x1c] sm:$0x1] %v1859_v3  ;;  %v1821_v8 = vsel %vm5441_vm5, 0, %v1820_v5  ;;  %v1855_v17 = vld [vmem:[#allocation2 + $0x14] sm:$0x1] }
  0x65   : > { %1211 = vmatmul.mubr.bf16.gmra.mxu0 %v4932_v22  ;;  %v1560_v22 = vrot.slane %v1559_v12, 4  ;;  %v1588_v43 = vrot.slane %v1587_v36, 4  ;;  %4562 = vmatpush3.bf16.msra.mxu1 %v4940_v61  ;;  %1822 = vst [vmem:[#allocation2 + $0x8] sm:$0x1] %v1821_v8  ;;  %v1829_v12 = vld [vmem:[#allocation2 + $0x20] sm:$0x1] }
  0x66   : > { %1478 = vmatmul.mubr.bf16.gmra.mxu1 %v4935_v23  ;;  %4756 = vmatpush3.bf16.msra.mxu0 %v4933_v20  ;;  %v4173_v20 = vld [vmem:[%s5187_s16 + $0x40] sm:$0xf]  ;;  %v1578_v23 = vrot.slane %v1576_v13, 5  ;;  %v1574_v35 = vrot.slane %v1573_v26, 4  ;;  %v1602_v51 = vrot.slane %v1601_v45, 4  ;;  %v1830_v14 = vsel %vm5441_vm5, 0, %v1829_v12 }
  0x67   : > { %4757 = vmatprep.subr.bf16.mxu0 %v4936_v33  ;;  %4759 = vmatprep.mubr.bf16.mxu0 %v4175_v16  ;;  %v1565_v30 = vsel %vm5198_vm2, %v1560_v22, %v1564_v6  ;;  %v1609_v40 = vshrl.u32 %v4173_v20, 16  ;;  %v1612_v41 = vshll.u32 %v4173_v20, 16  ;;  %v1593_v48 = vsel %vm5198_vm2, %v1588_v43, %v1592_v31  ;;  %v1852_v6 = vld [vmem:[#allocation2 + $0xc] sm:$0x1]  ;;  %v1861_v13 = vld [vmem:[#allocation2 + $0x24] sm:$0x1] }
  0x68   : > { %v4176_v34 = vcombine.low %v1551_v21, %v1565_v30  ;;  %v1579_v42 = vsel %vm5198_vm2, %v1574_v35, %v1578_v23  ;;  %v1853_v9 = vsel %vm5448_vm7, 0, %v1852_v6  ;;  %4563 = vmatprep.subr.bf16.mxu1 %v4943_v10  ;;  %1831 = vst [vmem:[#allocation2 + $0x20] sm:$0x1] %v1830_v14  ;;  %v1823_v16 = vld [vmem:[#allocation2 + $0x10] sm:$0x1]  ;;  %v1856_v19 = vsel %vm5448_vm7, 0, %v1855_v17 }
  0x69   : > { %v1611_v46 = vrot.slane %v1609_v40, 4  ;;  %v1614_v47 = vrot.slane %v1612_v41, 5  ;;  %v4177_v50 = vcombine.low %v1579_v42, %v1593_v48  ;;  %1854 = vst [vmem:[#allocation2 + $0xc] sm:$0x1] %v1853_v9  ;;  %4564 = vmatpush3.bf16.msra.mxu1 %v4944_v11  ;;  %v1824_v18 = vsel %vm5441_vm5, 0, %v1823_v16  ;;  %v4945_v20 = vld [vmem:[%s6422_s2 + $0x70] sm:$0xff]  }
  0x6a   : > { %4758 = vmatpush3.bf16.msra.mxu0 %v4936_v33  ;;  %v1604_v33 = vshll.u32 %v4172_v15, 16  ;;  %v1862_v15 = vsel %vm5448_vm7, 0, %v1861_v13  ;;  %1825 = vst [vmem:[#allocation2 + $0x10] sm:$0x1] %v1824_v18  ;;  %1857 = vst [vmem:[#allocation2 + $0x14] sm:$0x1] %v1856_v19  ;;  %4565 = vmatprep.subr.bf16.mxu1 %v4947_v27 }
  0x6b   : > { %v1615_v52 = vor.u32 %v1614_v47, %v1611_v46  ;;  %4599 = vmatprep.subr.bf16.mxu0 %v4941_v4  ;;  %1863 = vst [vmem:[#allocation2 + $0x24] sm:$0x1] %v1862_v15  ;;  %v1838_v21 = vld [vmem:[#allocation2 + $0x38] sm:$0x1]  ;;  %v1870_v22 = vld [vmem:[#allocation2 + $0x3c] sm:$0x1] }
  0x6c   : > { %v1606_v39 = vrot.slane %v1604_v33, 5  ;;  %v5042_v23 = vmov 0   ;;  %v1839_v24 = vsel %vm5441_vm5, 0, %v1838_v21  ;;  %v1871_v25 = vsel %vm5448_vm7, 0, %v1870_v22  ;;  %v4946_v26 = vld [vmem:[%s6422_s2 + $0x30] sm:$0xff]   ;;  %v4948_v28 = vld [vmem:[%s6422_s2 + $0xa0] sm:$0xff]  }
  0x6d   : > { %4760 = vmatmul.mubr.bf16.vlgmr.msra.gmra.mxu0 %v4176_v34  ;;  %v1616_v55 = vrot.slane %v1615_v52, 4  ;;  %1809 = vst [vmem:[#allocation2] sm:$0xf] %v5042_v23  ;;  %1810 = vst [vmem:[#allocation2 + $0x4] sm:$0x1] %v5042_v23  ;;  %v4949_v31 = vld [vmem:[%s6422_s2 + $0x68] sm:$0xff]   ;;  %4566 = vmatpush3.bf16.msra.mxu1 %v4948_v28 }
  0x6e   : > { %4763 = vmatprep.mubr.bf16.mxu0 %v4177_v50  ;;  %v1607_v54 = vsel %vm5198_vm2, %v1602_v51, %v1606_v39  ;;  %4600 = vmatpush3.bf16.msra.mxu0 %v4942_v7  ;;  %1812 = vst [vmem:[#allocation2 + $0x48] sm:$0xf] %v5042_v23  ;;  %1813 = vst [vmem:[#allocation2 + $0x4c] sm:$0x1] %v5042_v23  ;;  %v1864_v30 = vld [vmem:[#allocation2 + $0x2c] sm:$0x1] }
  0x6f   : > { %v1621_v56 = vsel %vm5198_vm2, %v1616_v55, %v1620_v53  ;;  %4601 = vmatprep.subr.bf16.mxu0 %v4945_v20  ;;  %1840 = vst [vmem:[#allocation2 + $0x38] sm:$0x1] %v1839_v24  ;;  %1872 = vst [vmem:[#allocation2 + $0x3c] sm:$0x1] %v1871_v25  ;;  %v1865_v33 = vsel %vm5448_vm7, 0, %v1864_v30  ;;  %v4950_v34 = vld [vmem:[%s6422_s2 + $0x28] sm:$0xff]  }
  0x70   : > { %v4178_v57 = vcombine.low %v1607_v54, %v1621_v56  ;;  %1834 = vst [vmem:[#allocation2 + $0x28] sm:$0x1] %v1833_v32  ;;  %1866 = vst [vmem:[#allocation2 + $0x2c] sm:$0x1] %v1865_v33  ;;  %v4951_v35 = vld [vmem:[%s6422_s2 + $0xd8] sm:$0xff]   ;;  %v4953_v39 = vld [vmem:[%s6422_s2 + $0x60] sm:$0xff]  }
  0x71   : > { %v4952_v36 = vld [vmem:[%s6422_s2 + $0x98] sm:$0xff]   ;;  %v1841_v37 = vld [vmem:[#allocation2 + $0x40] sm:$0x1]  ;;  %v1873_v38 = vld [vmem:[#allocation2 + $0x44] sm:$0x1]  ;;  %4567 = vmatprep.subr.bf16.mxu1 %v4951_v35 }
  0x72   : > { %4602 = vmatpush3.bf16.msra.mxu0 %v4946_v26  ;;  %v1842_v40 = vsel %vm5441_vm5, 0, %v1841_v37  ;;  %v1874_v41 = vsel %vm5448_vm7, 0, %v1873_v38  ;;  %4568 = vmatpush3.bf16.msra.mxu1 %v4952_v36  ;;  %v4954_v42 = vld [vmem:[%s6422_s2 + $0x20] sm:$0xff]   ;;  %v4955_v43 = vld [vmem:[%s6422_s2 + $0xd0] sm:$0xff]   ;;  %v4957_v54 = vld [vmem:[%s6422_s2 + $0x58] sm:$0xff]  }
  0x73   : > { %4603 = vmatprep.subr.bf16.mxu0 %v4949_v31  ;;  %1843 = vst [vmem:[#allocation2 + $0x40] sm:$0x1] %v1842_v40  ;;  %1875 = vst [vmem:[#allocation2 + $0x44] sm:$0x1] %v1874_v41  ;;  %v4956_v45 = vld [vmem:[%s6422_s2 + $0x90] sm:$0xff]   ;;  %4569 = vmatprep.subr.bf16.mxu1 %v4955_v43  ;;  %v4958_v56 = vld [vmem:[%s6422_s2 + $0x18] sm:$0xff]  }
  0x74   : > { %v1849_v44 = vld [vmem:[#allocation2 + $0x4] sm:$0x1]  ;;  %v1817_v47 = vld [vmem:[#allocation2] sm:$0x1]  ;;  %v1835_v50 = vld [vmem:[#allocation2 + $0x30] sm:$0x1] }
  0x75   : > { %4764 = vmatmul.mubr.bf16.gmra.mxu0 %v4178_v57  ;;  %v1850_v46 = vsel %vm5448_vm7, 0, %v1849_v44  ;;  %v1867_v51 = vld [vmem:[#allocation2 + $0x34] sm:$0x1]  ;;  %v1836_v52 = vsel %vm5441_vm5, 0, %v1835_v50  ;;  %v1818_v55 = vsel %vm5441_vm5, 0, %v1817_v47  ;;  %v4965_v3 = vld [vmem:[%s6422_s2 + $0x48] sm:$0xff]  }
  0x76   : > { %4604 = vmatpush3.bf16.msra.mxu0 %v4950_v34  ;;  %1851 = vst [vmem:[#allocation2 + $0x4] sm:$0x1] %v1850_v46  ;;  %v1868_v53 = vsel %vm5448_vm7, 0, %v1867_v51  ;;  %1837 = vst [vmem:[#allocation2 + $0x30] sm:$0x1] %v1836_v52  ;;  %4570 = vmatpush3.bf16.msra.mxu1 %v4956_v45  ;;  %v4962_v61 = vld [vmem:[%s6422_s2 + $0x10] sm:$0xff]  }
  0x77   : > { %4605 = vmatprep.subr.bf16.mxu0 %v4953_v39  ;;  %1869 = vst [vmem:[#allocation2 + $0x34] sm:$0x1] %v1868_v53  ;;  %1819 = vst [vmem:[#allocation2] sm:$0x1] %v1818_v55  ;;  %4571 = vmatprep.subr.bf16.mxu1 %v4959_v58  ;;  %v4966_v4 = vld [vmem:[%s6422_s2 + $0x8] sm:$0xff]   ;;  %v4968_v5 = vld [vmem:[%s6422_s2 + $0x178] sm:$0xff]  }
  0x78   : > { %v4971_v8 = vld [vmem:[%s6422_s2 + $0x40] sm:$0xff]   ;;  %v4976_v12 = vld [vmem:[%s6422_s2 + $0x1f8] sm:$0xff]   ;;  %v1844_v37 = vld [vmem:[#allocation2 + $0x48] sm:$0x1] }
  0x79   : > { %v4972_v10 = vld [vmem:[%s6422_s2] sm:$0xff]   ;;  %v1876_v38 = vld [vmem:[#allocation2 + $0x4c] sm:$0x1]  ;;  %v1845_v41 = vsel %vm5441_vm5, 0, %v1844_v37 }
  0x7a   : > { %4606 = vmatpush3.bf16.msra.mxu0 %v4954_v42  ;;  %4572 = vmatpush3.bf16.msra.mxu1 %v4960_v59  ;;  %v1877_v42 = vsel %vm5448_vm7, 0, %v1876_v38  ;;  %1846 = vst [vmem:[#allocation2 + $0x48] sm:$0x1] %v1845_v41 }
  0x7b   : > { %4607 = vmatprep.subr.bf16.mxu0 %v4957_v54  ;;  %4573 = vmatprep.subr.bf16.mxu1 %v4963_v62  ;;  %1878 = vst [vmem:[#allocation2 + $0x4c] sm:$0x1] %v1877_v42 }
  0x7e   : > { %4608 = vmatpush3.bf16.msra.mxu0 %v4958_v56  ;;  %4574 = vmatpush3.bf16.msra.mxu1 %v4964_v1  ;;  %v5646_v38 = vld [vmem:[#allocation2] sm:$0xf] }
  0x7f   : > { %4609 = vmatprep.subr.bf16.mxu0 %v4961_v60  ;;  %4639 = vmatprep.subr.bf16.mxu1 %v4968_v5 }
  0x82   : > { %4610 = vmatpush3.bf16.msra.mxu0 %v4962_v61 }
  0x83   : > { %4611 = vmatprep.subr.bf16.mxu0 %v4965_v3 }
  0x86   : > { %4612 = vmatpush3.bf16.msra.mxu0 %v4966_v4 }
  0x87   : > { %4613 = vmatprep.subr.bf16.mxu0 %v4971_v8 }
  0x8a   : > { %4614 = vmatpush3.bf16.msra.mxu0 %v4972_v10 }
  0x8b   : > { %4679 = vmatprep.subr.bf16.mxu0 %v4976_v12 }
  0xed   : > { %v5573_v6 = vpop.f32.mrf.mxu0 }
  0xee   : > { %v5528_v48 = vpop.f32.mrf.mxu1 }
  0xef   : > { %v5580_v9 = vpop.f32.mrf.mxu0 }
  0xf0   : > { %v5542_v57 = vpop.f32.mrf.mxu1  ;;  %v4405_v42 = vadd.f32 %v5580_v9, %v5573_v6 }
  0xf1   : > { %v5588_v13 = vpop.f32.mrf.mxu0  ;;  %v4445_v49 = vadd.f32 %v5542_v57, %v5528_v48 }
  0xf2   : > { %v5559_v0 = vpop.f32.mrf.mxu1 }
  0xf3   : > { %v5590_v15 = vpop.f32.mrf.mxu0  ;;  %v819_v57 = vadd.f32 %v4445_v49, %v4405_v42 }
  0xf4   : > { %v5575_v7 = vpop.f32.mrf.mxu1  ;;  %v4408_v6 = vadd.f32 %v5590_v15, %v5588_v13 }
  0xf5   : > { %v4409_v17 = vpop.f32.mrf.mxu0  ;;  %v4448_v48 = vadd.f32 %v5575_v7, %v5559_v0 }
  0xf6   : > { %v4449_v11 = vpop.f32.mrf.mxu1 }
  0xf7   : > { %v4410_v19 = vpop.f32.mrf.mxu0 }
  0xf8   : > { %v4450_v14 = vpop.f32.mrf.mxu1  ;;  %v4411_v10 = vadd.f32 %v4410_v19, %v4409_v17  ;;  %v5654_v19 = vld [vmem:[#allocation2 + $0x4] sm:$0x1] }
  0xf9   : > { %v4412_v21 = vpop.f32.mrf.mxu0  ;;  %v4451_v12 = vadd.f32 %v4450_v14, %v4449_v11 }
  0xfa   : > { %v5592_v16 = vpop.f32.mrf.mxu1 }
  0xfb   : > { %v4413_v23 = vpop.f32.mrf.mxu0 }
  0xfc   : > { %v4453_v18 = vpop.f32.mrf.mxu1 }
  0xfd   : > { %v5600_v25 = vpop.f32.mrf.mxu0  ;;  %v4454_v17 = vadd.f32 %v4453_v18, %v5592_v16  ;;  %v2271_v16 = vrot.slane %v5654_v19, 5 }
  0xfe   : > { %v5594_v20 = vpop.f32.mrf.mxu1 }
  0xff   : > { %v5602_v26 = vpop.f32.mrf.mxu0 }
 0x100   : > { %v5596_v22 = vpop.f32.mrf.mxu1  ;;  %v4417_v49 = vadd.f32 %v5602_v26, %v5600_v25 }
 0x101   : > { %v5606_v28 = vpop.f32.mrf.mxu0 }
 0x102   : > { %v5598_v24 = vpop.f32.mrf.mxu1 }
 0x103   : > { %v5610_v30 = vpop.f32.mrf.mxu0 }
 0x104   : > { %v5604_v27 = vpop.f32.mrf.mxu1  ;;  %v4420_v7 = vadd.f32 %v5610_v30, %v5606_v28 }
 0x105   : > { %v5614_v32 = vpop.f32.mrf.mxu0  ;;  %v4460_v0 = vadd.f32 %v5604_v27, %v5598_v24  ;;  %v5686_v24 = vld [vmem:[%s6424_s4] ss:$0 sm:$0xff] }
 0x106   : > { %v5608_v29 = vpop.f32.mrf.mxu1 }
 0x107   : > { %v5618_v34 = vpop.f32.mrf.mxu0 }
 0x108   : > { %v5612_v31 = vpop.f32.mrf.mxu1 }
 0x109   : > { %v5620_v35 = vpop.f32.mrf.mxu0 }
 0x10a   : > { %v5616_v33 = vpop.f32.mrf.mxu1 }
 0x10b   : > { %v5624_v39 = vpop.f32.mrf.mxu0 }
 0x10c   : > { %v5622_v36 = vpop.f32.mrf.mxu1  ;;  %v4426_v25 = vadd.f32 %v5624_v39, %v5620_v35  ;;  %v838_v39 = vadd.f32 %v4460_v0, %v4420_v7 }
 0x10d   : > { %v4483_v44 = vpop.f32.mrf.mxu0 }
 0x10e   : > { %v4523_v40 = vpop.f32.mrf.mxu1 }
 0x10f   : > { %v4484_v46 = vpop.f32.mrf.mxu0 }
 0x110   : > { %v4524_v43 = vpop.f32.mrf.mxu1  ;;  %v4485_v11 = vadd.f32 %v4484_v46, %v4483_v44 }
 0x111   : > { %v4486_v50 = vpop.f32.mrf.mxu0 }
 0x112   : > { %v5630_v45 = vpop.f32.mrf.mxu1  ;;  %v1219_v46 = vadd.f32 %v4485_v11, %v819_v57 }
 0x113   : > { %v4487_v52 = vpop.f32.mrf.mxu0 }
 0x114   : > { %v5632_v47 = vpop.f32.mrf.mxu1  ;;  %v4488_v13 = vadd.f32 %v4487_v52, %v4486_v50 }
 0x115   : > { %v4489_v54 = vpop.f32.mrf.mxu0  ;;  %v4528_v27 = vadd.f32 %v5632_v47, %v5630_v45 }
 0x116   : > { %v4529_v51 = vpop.f32.mrf.mxu1 }
 0x117   : > { %v4490_v56 = vpop.f32.mrf.mxu0 }
 0x118   : > { %v4530_v53 = vpop.f32.mrf.mxu1  ;;  %v4491_v63 = vadd.f32 %v4490_v56, %v4489_v54 }
 0x119   : > { %v4492_v59 = vpop.f32.mrf.mxu0  ;;  %v4531_v54 = vadd.f32 %v4530_v53, %v4529_v51 }
 0x11a   : > { %v4532_v55 = vpop.f32.mrf.mxu1 }
 0x11b   : > { %v4493_v2 = vpop.f32.mrf.mxu0 }
 0x11c   : > { %v4533_v58 = vpop.f32.mrf.mxu1  ;;  %v4494_v56 = vadd.f32 %v4493_v2, %v4492_v59 }
 0x11d   : > { %v4495_v61 = vpop.f32.mrf.mxu0  ;;  %v4534_v53 = vadd.f32 %v4533_v58, %v4532_v55 }
 0x11e   : > { %v5634_v60 = vpop.f32.mrf.mxu1 }
 0x11f   : > { %6438 = vst [vmem:[#allocation5_spill] sm:$0xff] %v5634_v60  ;;  %v4496_v62 = vpop.f32.mrf.mxu0  ;;  %v2059_v60 = vshrl.u32 %v5646_v38, 16 }
 0x120   : > { %v5636_v1 = vpop.f32.mrf.mxu1 }
 0x121   : > { %6439 = vst [vmem:[#allocation6_spill] sm:$0xff] %v5636_v1  ;;  %v5638_v3 = vpop.f32.mrf.mxu0  ;;  %v5664_v18 = vrot.slane %v2059_v60, 4 }
 0x122   : > { %6440 = vst [vmem:[#allocation7_spill] sm:$0xff] %v5638_v3  ;;  %v5642_v5 = vpop.f32.mrf.mxu1  ;;  %v822_v3 = vadd.f32 %v4448_v48, %v4408_v6 }
 0x123   : > { %v5640_v4 = vpop.f32.mrf.mxu0  ;;  %6442 = vst [vmem:[#allocation9_spill] sm:$0xff] %v5642_v5  ;;  %v4414_v5 = vadd.f32 %v4413_v23, %v4412_v21  ;;  %v2062_v23 = vshll.u32 %v5646_v38, 16 }
 0x124   : > { %6441 = vst [vmem:[#allocation8_spill] sm:$0xff] %v5640_v4  ;;  %v5644_v37 = vpop.f32.mrf.mxu1  ;;  %v827_v4 = vadd.f32 %v4451_v12, %v4411_v10  ;;  %v4525_v12 = vadd.f32 %v4524_v43, %v4523_v40  ;;  %v4423_v40 = vadd.f32 %v5618_v34, %v5614_v32  ;;  %v4463_v43 = vadd.f32 %v5612_v31, %v5608_v29 }
 0x125   : > { %v4501_v8 = vpop.f32.mrf.mxu0  ;;  %6443 = vst [vmem:[#allocation10_spill] sm:$0xff] %v5644_v37  ;;  %v5656_v37 = vld [vmem:[#allocation2] sm:$0xe]  ;;  %v830_v44 = vadd.f32 %v4454_v17, %v4414_v5  ;;  %v1220_v26 = vadd.f32 %v4488_v13, %v822_v3  ;;  %v4497_v31 = vadd.f32 %v4496_v62, %v4495_v61 }
 0x126   : > { %v4541_v14 = vpop.f32.mrf.mxu1  ;;  %v1221_v9 = vadd.f32 %v4491_v63, %v827_v4  ;;  %v4205_v21 = vrot.slane %v5656_v37, 9  ;;  %v4457_v63 = vadd.f32 %v5596_v22, %v5594_v20  ;;  %v4466_v20 = vadd.f32 %v5622_v36, %v5616_v33  ;;  %v5693_v33 = vld [vmem:[%s6424_s4 + $0x1] ss:$0 sm:$0xff] }
 0x127   : > { %v4502_v41 = vpop.f32.mrf.mxu0  ;;  %v1222_v51 = vadd.f32 %v4494_v56, %v830_v44  ;;  %v1486_v32 = vadd.f32 %v4525_v12, %v1219_v46  ;;  %v5695_v36 = vrot.slane %v2062_v23, 5  ;;  %v843_v47 = vadd.f32 %v4463_v43, %v4423_v40  ;;  %v6446_v17 = vld [vmem:[#allocation5_spill] sm:$0xff]  ;;  %v5706_v23 = vld [vmem:[#allocation2 + $0x48] sm:$0xf] }
 0x128   : > { %v4542_v15 = vpop.f32.mrf.mxu1  ;;  %v1488_v59 = vadd.f32 %v4531_v54, %v1221_v9  ;;  %v835_v29 = vadd.f32 %v4457_v63, %v4417_v49  ;;  %v4503_v34 = vadd.f32 %v4502_v41, %v4501_v8  ;;  %v846_v55 = vadd.f32 %v4466_v20, %v4426_v25  ;;  %v6447_v11 = vld [vmem:[#allocation6_spill] sm:$0xff] }
 0x129   : > { %v4504_v1 = vpop.f32.mrf.mxu0  ;;  %v1489_v45 = vadd.f32 %v4534_v53, %v1222_v51  ;;  %v6444_v58 = vld [vmem:[#allocation7_spill] sm:$0xff]  ;;  %v1487_v41 = vadd.f32 %v4528_v27, %v1220_v26  ;;  %v4537_v6 = vadd.f32 %v6447_v11, %v6446_v17  ;;  %v4543_v57 = vadd.f32 %v4542_v15, %v4541_v14 }
 0x12a   : > { %v4544_v28 = vpop.f32.mrf.mxu1  ;;  %v1223_v42 = vadd.f32 %v4497_v31, %v835_v29  ;;  %v1225_v48 = vadd.f32 %v4503_v34, %v843_v47  ;;  %v6448_v46 = vld [vmem:[#allocation9_spill] sm:$0xff]  ;;  %v2068_v40 = vshll.u32 %v5654_v19, 16  ;;  %v3236_v43 = vshrl.u32 %v5706_v23, 16 }
 0x12b   : > { %v4505_v10 = vpop.f32.mrf.mxu0  ;;  %v6445_v2 = vld [vmem:[#allocation8_spill] sm:$0xff] }
 0x12c   : > { %v4500_v60 = vadd.f32 %v6445_v2, %v6444_v58  ;;  %v4506_v61 = vadd.f32 %v4505_v10, %v4504_v1  ;;  %v4545_v3 = vpop.f32.mrf.mxu1  ;;  %v6449_v12 = vld [vmem:[#allocation10_spill] sm:$0xff]  ;;  %v1492_v15 = vadd.f32 %v4543_v57, %v1225_v48  ;;  %v1490_v26 = vadd.f32 %v4537_v6, %v1223_v42 }
 0x12d   : > { %v4761_v22 = vpop.f32.mrf.mxu0  ;;  %v4540_v13 = vadd.f32 %v6449_v12, %v6448_v46  ;;  %v4546_v63 = vadd.f32 %v4545_v3, %v4544_v28 }
 0x12e   : > { %v1769_v30 = vadd.f32 %v4761_v22, %v1488_v59  ;;  %v1224_v44 = vadd.f32 %v4500_v60, %v838_v39  ;;  %v1226_v49 = vadd.f32 %v4506_v61, %v846_v55  ;;  %v2065_v59 = vor.u32 %v5695_v36, %v5664_v18 }
 0x12f   : > { %v1736_v35 = vpop.f32.mrf.mxu0 }
 0x130   : > { %v1782_v50 = vmul.f32 %v5686_v24, %v1769_v30  ;;  %v1767_v52 = vadd.f32 %v1736_v35, %v1486_v32  ;;  %v1493_v32 = vadd.f32 %v4546_v63, %v1226_v49  ;;  %v1491_v29 = vadd.f32 %v4540_v13, %v1224_v44  ;;  %v2012_v49 = vld [vmem:[#allocation2 + $0x20] sm:$0xf]  ;;  %v2015_v63 = vld [vmem:[#allocation2 + $0x24] sm:$0x1] }
 0x131   : > { %v4762_v62 = vpop.f32.mrf.mxu0 }
 0x132   : > { %v1795_v4 = vadd.f32 %v5693_v33, %v1782_v50  ;;  %v1780_v5 = vmul.f32 %v5686_v24, %v1767_v52  ;;  %v1770_v8 = vadd.f32 %v4762_v62, %v1489_v45  ;;  %v2006_v52 = vld [vmem:[#allocation2 + $0x18] sm:$0xf]  ;;  %v2009_v45 = vld [vmem:[#allocation2 + $0x1c] sm:$0x1] }
 0x133   : > { %v1739_v9 = vpop.f32.mrf.mxu0 }
 0x134   : > { %v1803_v54 = vmax.f32 %v1795_v4, 0.0  ;;  %v1793_v56 = vadd.f32 %v5693_v33, %v1780_v5  ;;  %v1783_v1 = vmul.f32 %v5686_v24, %v1770_v8  ;;  %v1768_v10 = vadd.f32 %v1739_v9, %v1487_v41  ;;  %v1994_v5 = vld [vmem:[#allocation2 + $0x8] sm:$0xf]  ;;  %v1997_v8 = vld [vmem:[#allocation2 + $0xc] sm:$0x1] }
 0x135   : > { %v4765_v53 = vpop.f32.mrf.mxu0 }
 0x136   : > { %v4358_v0 = vpack.c.bf16 %v1803_v54, %v1803_v54  ;;  %v1801_v7 = vmax.f32 %v1793_v56, 0.0  ;;  %v1796_v51 = vadd.f32 %v5693_v33, %v1783_v1  ;;  %v1781_v14 = vmul.f32 %v5686_v24, %v1768_v10 }
 0x137   : > { %v1773_v28 = vadd.f32 %v4765_v53, %v1492_v15  ;;  %v1752_v30 = vpop.f32.mrf.mxu0 }
 0x138   : > { %v1928_v25 = vshrl.u32 %v4358_v0, 16  ;;  %v4356_v20 = vpack.c.bf16 %v1801_v7, %v1801_v7  ;;  %v1804_v22 = vmax.f32 %v1796_v51, 0.0  ;;  %v1794_v27 = vadd.f32 %v5693_v33, %v1781_v14 }
 0x139   : > { %v1931_v34 = vshll.u32 %v4358_v0, 16  ;;  %v1786_v58 = vmul.f32 %v5686_v24, %v1773_v28  ;;  %v1771_v2 = vadd.f32 %v1752_v30, %v1490_v26  ;;  %v4766_v60 = vpop.f32.mrf.mxu0  ;;  %v3239_v28 = vshll.u32 %v5706_v23, 16 }
 0x13a   : > { %v1930_v31 = vrot.slane %v1928_v25, 7  ;;  %v1912_v35 = vshrl.u32 %v4356_v20, 16  ;;  %v4359_v39 = vpack.c.bf16 %v1804_v22, %v1804_v22  ;;  %v1915_v47 = vshll.u32 %v4356_v20, 16  ;;  %v2000_v25 = vld [vmem:[#allocation2 + $0x10] sm:$0xf] }
 0x13b   : > { %v1802_v55 = vmax.f32 %v1794_v27, 0.0  ;;  %v1799_v17 = vadd.f32 %v5693_v33, %v1786_v58  ;;  %v1784_v11 = vmul.f32 %v5686_v24, %v1771_v2  ;;  %v1755_v46 = vpop.f32.mrf.mxu0  ;;  %v1774_v7 = vadd.f32 %v4766_v60, %v1493_v32  ;;  %v2003_v20 = vld [vmem:[#allocation2 + $0x14] sm:$0x1]  ;;  %v2033_v58 = vld [vmem:[#allocation2 + $0x3c] sm:$0x1] }
 0x13c   : > { %v1933_v61 = vor.u32 %v1931_v34, %v1930_v31  ;;  %v1934_v62 = vrot.slane %v1930_v31, 4  ;;  %v1914_v3 = vrot.slane %v1912_v35, 7  ;;  %v1936_v4 = vshrl.u32 %v4359_v39, 16 }
 0x13d   : > { %v1939_v41 = vshll.u32 %v4359_v39, 16  ;;  %v4357_v42 = vpack.c.bf16 %v1802_v55, %v1802_v55  ;;  %v1807_v44 = vmax.f32 %v1799_v17, 0.0  ;;  %v1797_v0 = vadd.f32 %v5693_v33, %v1784_v11  ;;  %v2030_v55 = vld [vmem:[#allocation2 + $0x38] sm:$0xf] }
 0x13e   : > { %v2007_v6 = vsel %vm5719_vm9, %v1933_v61, %v2006_v52  ;;  %v2010_v57 = vsel %vm5441_vm5, %v1934_v62, %v2009_v45  ;;  %v1917_v9 = vor.u32 %v1915_v47, %v1914_v3  ;;  %v1918_v54 = vrot.slane %v1914_v3, 4 }
 0x13f   : > { %2008 = vst [vmem:[#allocation2 + $0x18] sm:$0xf] %v2007_v6  ;;  %2011 = vst [vmem:[#allocation2 + $0x1c] sm:$0x1] %v2010_v57  ;;  %v1938_v56 = vrot.slane %v1936_v4, 7  ;;  %v1920_v1 = vshrl.u32 %v4357_v42, 16  ;;  %v4362_v53 = vpack.c.bf16 %v1807_v44, %v1807_v44  ;;  %v1787_v26 = vmul.f32 %v5686_v24, %v1774_v7 }
 0x140   : > { %v1923_v10 = vshll.u32 %v4357_v42, 16  ;;  %v1995_v12 = vsel %vm5719_vm9, %v1917_v9, %v1994_v5  ;;  %v1998_v13 = vsel %vm5441_vm5, %v1918_v54, %v1997_v8  ;;  %v1805_v22 = vmax.f32 %v1797_v0, 0.0  ;;  %v2018_v5 = vld [vmem:[#allocation2 + $0x28] sm:$0xf]  ;;  %v2021_v8 = vld [vmem:[#allocation2 + $0x2c] sm:$0x1] }
 0x141   : > { %1996 = vst [vmem:[#allocation2 + $0x8] sm:$0xf] %v1995_v12  ;;  %1999 = vst [vmem:[#allocation2 + $0xc] sm:$0x1] %v1998_v13  ;;  %v1941_v51 = vor.u32 %v1939_v41, %v1938_v56  ;;  %v1942_v14 = vrot.slane %v1938_v56, 4  ;;  %v1922_v15 = vrot.slane %v1920_v1, 7  ;;  %v1772_v27 = vadd.f32 %v1755_v46, %v1491_v29 }
 0x142   : > { %v1960_v35 = vshrl.u32 %v4362_v53, 16  ;;  %v4360_v39 = vpack.c.bf16 %v1805_v22, %v1805_v22  ;;  %v1800_v52 = vadd.f32 %v5693_v33, %v1787_v26  ;;  %v5744_v45 = vrot.slane %v2068_v40, 5  ;;  %v2024_v26 = vld [vmem:[#allocation2 + $0x30] sm:$0xf] }
 0x143   : > { %v2013_v30 = vsel %vm5719_vm9, %v1941_v51, %v2012_v49  ;;  %v2016_v32 = vsel %vm5441_vm5, %v1942_v14, %v2015_v63  ;;  %v1925_v31 = vor.u32 %v1923_v10, %v1922_v15  ;;  %v1926_v34 = vrot.slane %v1922_v15, 4  ;;  %v2036_v49 = vld [vmem:[#allocation2 + $0x40] sm:$0xf]  ;;  %v2039_v63 = vld [vmem:[#allocation2 + $0x44] sm:$0x1] }
 0x144   : > { %2014 = vst [vmem:[#allocation2 + $0x20] sm:$0xf] %v2013_v30  ;;  %2017 = vst [vmem:[#allocation2 + $0x24] sm:$0x1] %v2016_v32  ;;  %v1785_v2 = vmul.f32 %v5686_v24, %v1772_v27  ;;  %v5754_v60 = vrot.slane %v2065_v59, 4  ;;  %v1962_v61 = vrot.slane %v1960_v35, 7 }
 0x145   : > { %v2001_v29 = vsel %vm5719_vm9, %v1925_v31, %v2000_v25  ;;  %v2004_v47 = vsel %vm5441_vm5, %v1926_v34, %v2003_v20  ;;  %v1963_v40 = vshll.u32 %v4362_v53, 16  ;;  %v1944_v62 = vshrl.u32 %v4360_v39, 16  ;;  %v4969_v25 = vld [vmem:[%s6422_s2 + $0x138] sm:$0xff]   ;;  %v2027_v27 = vld [vmem:[#allocation2 + $0x34] sm:$0x1] }
 0x146   : > { %2002 = vst [vmem:[#allocation2 + $0x10] sm:$0xf] %v2001_v29  ;;  %2005 = vst [vmem:[#allocation2 + $0x14] sm:$0x1] %v2004_v47  ;;  %v1808_v3 = vmax.f32 %v1800_v52, 0.0  ;;  %v1947_v4 = vshll.u32 %v4360_v39, 16  ;;  %v1798_v41 = vadd.f32 %v5693_v33, %v1785_v2  ;;  %v2272_v33 = vsel %vm5765_vm12, %v4205_v21, %v2271_v16 }
 0x147   : > { %v5759_v42 = vrot.slane %v3236_v43, 4  ;;  %v5761_v24 = vrot.slane %v3239_v28, 5  ;;  %v1965_v18 = vor.u32 %v1963_v40, %v1962_v61  ;;  %v1966_v36 = vrot.slane %v1962_v61, 4  ;;  %v5796_v20 = vld [vmem:[#allocation2 + $0x1c] sm:$0x1]  ;;  %v4973_v31 = vld [vmem:[%s6422_s2 + $0x170] sm:$0xff]  }
 0x148   : > { %v1946_v59 = vrot.slane %v1944_v62, 7  ;;  %v4363_v17 = vpack.c.bf16 %v1808_v3, %v1808_v3  ;;  %v2051_v11 = vld [vmem:[#allocation2 + $0xc] sm:$0x1]  ;;  %v1806_v57 = vmax.f32 %v1798_v41, 0.0  ;;  %v2243_v9 = vld [vmem:[#allocation2 + $0x8] sm:$0xe]  ;;  %v2071_v56 = vsel %vm5198_vm2, %v5754_v60, %v5744_v45 }
 0x149   : > { %v2275_v23 = vrot.slane %v2051_v11, 5  ;;  %v5775_v43 = vld [vmem:[#allocation2 + $0x8] sm:$0xf]  ;;  %v2031_v1 = vsel %vm5719_vm9, %v1965_v18, %v2030_v55  ;;  %v2034_v10 = vsel %vm5441_vm5, %v1966_v36, %v2033_v58  ;;  %v4206_v46 = vrot.slane %v2243_v9, 9  ;;  %v2245_v22 = vld [vmem:[#allocation2 + $0x18] sm:$0xe] }
 0x14a   : > { %v1949_v19 = vor.u32 %v1947_v4, %v1946_v59  ;;  %v1950_v44 = vrot.slane %v1946_v59, 4  ;;  %2032 = vst [vmem:[#allocation2 + $0x38] sm:$0xf] %v2031_v1  ;;  %2035 = vst [vmem:[#allocation2 + $0x3c] sm:$0x1] %v2034_v10  ;;  %v1968_v37 = vshrl.u32 %v4363_v17, 16  ;;  %v4361_v16 = vpack.c.bf16 %v1806_v57, %v1806_v57 }
 0x14b   : > { %v1971_v21 = vshll.u32 %v4363_v17, 16  ;;  %v2073_v0 = vshrl.u32 %v5775_v43, 16  ;;  %v2076_v7 = vshll.u32 %v5775_v43, 16  ;;  %v2276_v53 = vsel %vm5765_vm12, %v4206_v46, %v2275_v23  ;;  %v4970_v32 = vld [vmem:[#allocation2 + $0x18] ss:$8 sps:$4 sm:$0xff]   ;;  %v4974_v17 = vld [vmem:[%s6422_s2 + $0x130] sm:$0xff]  }
 0x14c   : > { %v2019_v12 = vsel %vm5719_vm9, %v1949_v19, %v2018_v5  ;;  %v2022_v13 = vsel %vm5441_vm5, %v1950_v44, %v2021_v8  ;;  %v1970_v51 = vrot.slane %v1968_v37, 7  ;;  %v1952_v14 = vshrl.u32 %v4361_v16, 16  ;;  %v5809_v36 = vld [vmem:[#allocation2 + $0x18] sm:$0xf]  ;;  %v4978_v10 = vld [vmem:[%s6422_s2 + $0x168] sm:$0xff]   ;;  %v4981_v45 = vld [vmem:[%s6422_s2 + $0x1f0] sm:$0xff]  }
 0x14d   : > { %2020 = vst [vmem:[#allocation2 + $0x28] sm:$0xf] %v2019_v12  ;;  %2023 = vst [vmem:[#allocation2 + $0x2c] sm:$0x1] %v2022_v13  ;;  %v1955_v15 = vshll.u32 %v4361_v16, 16  ;;  %v4213_v30 = vcombine.low %v2272_v33, %v2276_v53  ;;  %v2075_v34 = vrot.slane %v2073_v0, 4  ;;  %v3242_v2 = vor.u32 %v5761_v24, %v5759_v42 }
 0x14e   : > { %v4967_v28 = vld [vmem:[#allocation2 + $0x8] ss:$8 sps:$4 sm:$0xff]   ;;  %v2078_v35 = vrot.slane %v2076_v7, 5  ;;  %v2082_v39 = vshll.u32 %v2051_v11, 16  ;;  %v1973_v52 = vor.u32 %v1971_v21, %v1970_v51  ;;  %v1974_v29 = vrot.slane %v1970_v51, 4  ;;  %v4977_v1 = vld [vmem:[%s6422_s2 + $0x1b8] sm:$0xff]  }
 0x14f   : > { %v1954_v47 = vrot.slane %v1952_v14, 7  ;;  %v2052_v55 = vld [vmem:[#allocation2 + $0x14] sm:$0x1]  ;;  %v2244_v58 = vld [vmem:[#allocation2 + $0x10] sm:$0xe]  ;;  %2509 = vmatprep.mubr.bf16.mxu1 %v4967_v28  ;;  %v4208_v57 = vrot.slane %v2245_v22, 9  ;;  %v4197_v48 = vcombine.low %v5646_v38, %v5775_v43 }
 0x150   : > { %v2079_v61 = vor.u32 %v2078_v35, %v2075_v34  ;;  %v2084_v40 = vrot.slane %v2082_v39, 5  ;;  %v4207_v62 = vrot.slane %v2244_v58, 9  ;;  %v2279_v3 = vrot.slane %v2052_v55, 5  ;;  %v5803_v4 = vld [vmem:[#allocation2 + $0x10] sm:$0xf]  ;;  %2510 = vmatmul.mubr.bf16.vlgmr.msra.gmra.mxu1 %v4213_v30  ;;  %v4979_v16 = vld [vmem:[%s6422_s2 + $0x128] sm:$0xff]  }
 0x151   : > { %v2037_v5 = vsel %vm5719_vm9, %v1973_v52, %v2036_v49  ;;  %v2040_v8 = vsel %vm5441_vm5, %v1974_v29, %v2039_v63  ;;  %v1957_v41 = vor.u32 %v1955_v15, %v1954_v47  ;;  %v1958_v18 = vrot.slane %v1954_v47, 4  ;;  %4640 = vmatpush3.bf16.msra.mxu1 %v4969_v25  ;;  %2517 = vmatprep.mubr.bf16.mxu1 %v4970_v32  ;;  %v5837_v46 = vld [vmem:[#allocation2 + $0x20] sm:$0xf]  ;;  %v5848_v63 = vld [vmem:[#allocation2 + $0x24] sm:$0x1]  ;;  %v4982_v53 = vld [vmem:[%s6422_s2 + $0x1b0] sm:$0xff]  }
 0x152   : > { %2038 = vst [vmem:[#allocation2 + $0x40] sm:$0xf] %v2037_v5  ;;  %2041 = vst [vmem:[#allocation2 + $0x44] sm:$0x1] %v2040_v8  ;;  %v2080_v59 = vrot.slane %v2079_v61, 4  ;;  %v2280_v11 = vsel %vm5765_vm12, %v4207_v62, %v2279_v3  ;;  %v2283_v9 = vrot.slane %v5796_v20, 5  ;;  %4641 = vmatprep.subr.bf16.mxu1 %v4973_v31  ;;  %v4198_v5 = vcombine.low %v5803_v4, %v5809_v36 }
 0x153   : > { %v2025_v33 = vsel %vm5719_vm9, %v1957_v41, %v2024_v26  ;;  %v2028_v23 = vsel %vm5441_vm5, %v1958_v18, %v2027_v27  ;;  %v2087_v19 = vshrl.u32 %v5803_v4, 16  ;;  %v2090_v44 = vshll.u32 %v5803_v4, 16  ;;  %v2246_v60 = vld [vmem:[#allocation2 + $0x20] sm:$0xe]  ;;  %v4988_v62 = vld [vmem:[%s6422_s2 + $0x158] sm:$0xff]  }
 0x154   : > { %2026 = vst [vmem:[#allocation2 + $0x30] sm:$0xf] %v2025_v33  ;;  %2029 = vst [vmem:[#allocation2 + $0x34] sm:$0x1] %v2028_v23  ;;  %v2085_v50 = vsel %vm5198_vm2, %v2080_v59, %v2084_v40  ;;  %v2096_v37 = vshll.u32 %v2052_v55, 16  ;;  %v2101_v21 = vshrl.u32 %v5809_v36, 16  ;;  %v2284_v13 = vsel %vm5765_vm12, %v4208_v57, %v2283_v9 }
 0x155   : > { %v4201_v12 = vcombine.low %v2071_v56, %v2085_v50  ;;  %v2089_v49 = vrot.slane %v2087_v19, 4  ;;  %v2092_v38 = vrot.slane %v2090_v44, 5  ;;  %v5846_v43 = vld [vmem:[#allocation2 + $0x28] sm:$0xf]  ;;  %4642 = vmatpush3.bf16.msra.mxu1 %v4974_v17  ;;  %v4214_v0 = vcombine.low %v2280_v11, %v2284_v13  ;;  %v4983_v25 = vld [vmem:[%s6422_s2 + $0x160] sm:$0xff]  }
 0x156   : > { %v2103_v7 = vrot.slane %v2101_v21, 4  ;;  %v2104_v51 = vshll.u32 %v5809_v36, 16  ;;  %v2110_v14 = vshll.u32 %v5796_v20, 16  ;;  %4643 = vmatprep.subr.bf16.mxu1 %v4978_v10  ;;  %v2098_v15 = vrot.slane %v2096_v37, 5  ;;  %v2055_v22 = vld [vmem:[#allocation2 + $0x2c] sm:$0x1] }
 0x157   : > { %2670 = vmatprep.mubr.bf16.mxu0 %v4201_v12  ;;  %v2093_v56 = vor.u32 %v2092_v38, %v2089_v49  ;;  %v2115_v20 = vshrl.u32 %v5837_v46, 16  ;;  %v2118_v26 = vshll.u32 %v5837_v46, 16  ;;  %v2124_v30 = vshll.u32 %v5848_v63, 16  ;;  %v2247_v31 = vld [vmem:[#allocation2 + $0x28] sm:$0xe]  ;;  %v4984_v47 = vld [vmem:[%s6422_s2 + $0x120] sm:$0xff]  }
 0x158   : > { %2671 = vmatmul.mubr.bf16.vlgmr.msra.gmra.mxu0 %v4197_v48  ;;  %v2106_v27 = vrot.slane %v2104_v51, 5  ;;  %v2112_v28 = vrot.slane %v2110_v14, 5  ;;  %v2129_v32 = vshrl.u32 %v5846_v43, 16  ;;  %2518 = vmatmul.mubr.bf16.gmra.mxu1 %v4214_v0  ;;  %v2132_v52 = vshll.u32 %v5846_v43, 16  ;;  %v4986_v55 = vld [vmem:[%s6422_s2 + $0x1e8] sm:$0xff]   ;;  %v4989_v10 = vld [vmem:[%s6422_s2 + $0x118] sm:$0xff]  }
 0x159   : > { %4680 = vmatpush3.bf16.msra.mxu0 %v4977_v1  ;;  %v2094_v34 = vrot.slane %v2093_v56, 4  ;;  %v2117_v35 = vrot.slane %v2115_v20, 4  ;;  %v2120_v39 = vrot.slane %v2118_v26, 5  ;;  %4644 = vmatpush3.bf16.msra.mxu1 %v4979_v16  ;;  %v2126_v58 = vrot.slane %v2124_v30, 5  ;;  %v4987_v11 = vld [vmem:[%s6422_s2 + $0x1a8] sm:$0xff]   ;;  %v4991_v48 = vld [vmem:[%s6422_s2 + $0x1e0] sm:$0xff]  }
 0x15a   : > { %v2107_v29 = vor.u32 %v2106_v27, %v2103_v7  ;;  %4681 = vmatprep.subr.bf16.mxu0 %v4981_v45  ;;  %v2131_v61 = vrot.slane %v2129_v32, 4  ;;  %v2138_v40 = vshll.u32 %v2055_v22, 16  ;;  %4645 = vmatprep.subr.bf16.mxu1 %v4983_v25  ;;  %v2134_v41 = vrot.slane %v2132_v52, 5  ;;  %v5897_v37 = vld [vmem:[#allocation2 + $0x38] sm:$0xf]  ;;  %v4992_v0 = vld [vmem:[%s6422_s2 + $0x1a0] sm:$0xff]  }
 0x15b   : > { %v4980_v3 = vld [vmem:[#allocation2 + $0x28] ss:$8 sps:$4 sm:$0xff]   ;;  %v2121_v8 = vor.u32 %v2120_v39, %v2117_v35  ;;  %v4209_v18 = vrot.slane %v2246_v60, 9  ;;  %v2099_v59 = vsel %vm5198_vm2, %v2094_v34, %v2098_v15  ;;  %v2287_v57 = vrot.slane %v5848_v63, 5  ;;  %v5888_v19 = vld [vmem:[#allocation2 + $0x34] sm:$0x1] }
 0x15c   : > { %v2108_v17 = vrot.slane %v2107_v29, 4  ;;  %v4210_v9 = vrot.slane %v2247_v31, 9  ;;  %v5883_v33 = vld [vmem:[#allocation2 + $0x30] sm:$0xf]  ;;  %2525 = vmatprep.mubr.bf16.mxu1 %v4980_v3  ;;  %v2135_v4 = vor.u32 %v2134_v41, %v2131_v61  ;;  %v2140_v36 = vrot.slane %v2138_v40, 5  ;;  %v4996_v26 = vld [vmem:[%s6422_s2 + $0x1d8] sm:$0xff]  }
 0x15d   : > { %4682 = vmatpush3.bf16.msra.mxu0 %v4982_v53  ;;  %v2122_v23 = vrot.slane %v2121_v8, 4  ;;  %v2291_v1 = vrot.slane %v2055_v22, 5  ;;  %4646 = vmatpush3.bf16.msra.mxu1 %v4984_v47  ;;  %v2288_v50 = vsel %vm5765_vm12, %v4209_v18, %v2287_v57  ;;  %v2057_v21 = vld [vmem:[#allocation2 + $0x3c] sm:$0x1]  ;;  %v2143_v16 = vshrl.u32 %v5883_v33, 16  ;;  %v4993_v45 = vld [vmem:[%s6422_s2 + $0x150] sm:$0xff]  }
 0x15e   : > { %v2113_v44 = vsel %vm5198_vm2, %v2108_v17, %v2112_v28  ;;  %4683 = vmatprep.subr.bf16.mxu0 %v4986_v55  ;;  %v2146_v12 = vshll.u32 %v5883_v33, 16  ;;  %v2136_v38 = vrot.slane %v2135_v4, 4  ;;  %4647 = vmatprep.subr.bf16.mxu1 %v4988_v62  ;;  %v2248_v7 = vld [vmem:[#allocation2 + $0x30] sm:$0xe]  ;;  %v5908_v51 = vld [vmem:[#allocation2 + $0x4c] sm:$0x1]  ;;  %v4199_v29 = vcombine.low %v5837_v46, %v5846_v43 }
 0x15f   : > { %v4202_v13 = vcombine.low %v2099_v59, %v2113_v44  ;;  %v2127_v49 = vsel %vm5198_vm2, %v2122_v23, %v2126_v58  ;;  %v2292_v63 = vsel %vm5765_vm12, %v4210_v9, %v2291_v1  ;;  %v2145_v60 = vrot.slane %v2143_v16, 4  ;;  %v2249_v53 = vld [vmem:[#allocation2 + $0x38] sm:$0xe]  ;;  %v4994_v20 = vld [vmem:[%s6422_s2 + $0x110] sm:$0xff]   ;;  %v5924_v35 = vld [vmem:[#allocation2 + $0xc] sm:$0x1] }
 0x160   : > { %v4215_v14 = vcombine.low %v2288_v50, %v2292_v63  ;;  %v2148_v56 = vrot.slane %v2146_v12, 5  ;;  %v2152_v15 = vshll.u32 %v5888_v19, 16  ;;  %v2141_v25 = vsel %vm5198_vm2, %v2136_v38, %v2140_v36  ;;  %v4990_v22 = vld [vmem:[#allocation2 + $0x38] ss:$8 sps:$4 sm:$0xff]   ;;  %v2831_v39 = vld [vmem:[#allocation2 + $0x8] sm:$0xe] }
 0x161   : > { %2678 = vmatprep.mubr.bf16.mxu0 %v4202_v13  ;;  %4684 = vmatpush3.bf16.msra.mxu0 %v4987_v11  ;;  %v2157_v27 = vshrl.u32 %v5897_v37, 16  ;;  %v2160_v28 = vshll.u32 %v5897_v37, 16  ;;  %v2166_v30 = vshll.u32 %v2057_v21, 16  ;;  %v4203_v32 = vcombine.low %v2127_v49, %v2141_v25  ;;  %v4997_v58 = vld [vmem:[%s6422_s2 + $0x198] sm:$0xff]   ;;  %v4998_v61 = vld [vmem:[%s6422_s2 + $0x148] sm:$0xff]   ;;  %v5001_v13 = vld [vmem:[%s6422_s2 + $0x190] sm:$0xff]  }
 0x162   : > { %2679 = vmatmul.mubr.bf16.gmra.mxu0 %v4198_v5  ;;  %2526 = vmatmul.mubr.bf16.gmra.mxu1 %v4215_v14  ;;  %v2149_v31 = vor.u32 %v2148_v56, %v2145_v60  ;;  %v4211_v34 = vrot.slane %v2248_v7, 9  ;;  %v3245_v52 = vshll.u32 %v5908_v51, 16  ;;  %v2295_v40 = vrot.slane %v5888_v19, 5  ;;  %v5936_v62 = vld [vmem:[#allocation2 + $0x14] sm:$0x1]  ;;  %v4999_v50 = vld [vmem:[%s6422_s2 + $0x108] sm:$0xff]  }
 0x163   : > { %4648 = vmatpush3.bf16.msra.mxu1 %v4989_v10  ;;  %2533 = vmatprep.mubr.bf16.mxu1 %v4990_v22  ;;  %v2159_v47 = vrot.slane %v2157_v27, 4  ;;  %v2162_v55 = vrot.slane %v2160_v28, 5  ;;  %v2154_v5 = vrot.slane %v2152_v15, 5  ;;  %v4212_v8 = vrot.slane %v2249_v53, 9  ;;  %v2832_v43 = vld [vmem:[#allocation2 + $0x10] sm:$0xe] }
 0x164   : > { %2686 = vmatprep.mubr.bf16.mxu0 %v4203_v32  ;;  %4685 = vmatprep.subr.bf16.mxu0 %v4991_v48  ;;  %v2150_v3 = vrot.slane %v2149_v31, 4  ;;  %v2299_v46 = vrot.slane %v2057_v21, 5  ;;  %v2168_v18 = vrot.slane %v2166_v30, 5  ;;  %v2296_v59 = vsel %vm5765_vm12, %v4211_v34, %v2295_v40  ;;  %v5940_v11 = vld [vmem:[#allocation2 + $0x10] sm:$0xf]  ;;  %v5002_v49 = vld [vmem:[%s6422_s2 + $0x140] sm:$0xff]  }
 0x165   : > { %4686 = vmatpush3.bf16.msra.mxu0 %v4992_v0  ;;  %4649 = vmatprep.subr.bf16.mxu1 %v4993_v45  ;;  %v2163_v41 = vor.u32 %v2162_v55, %v2159_v47  ;;  %v4253_v17 = vrot.slane %v2831_v39, 9  ;;  %v5942_v57 = vld [vmem:[#allocation2 + $0x18] sm:$0xf]  ;;  %v2729_v23 = vshll.u32 %v5924_v35, 16  ;;  %v2743_v4 = vshll.u32 %v5936_v62, 16  ;;  %v5000_v21 = vld [vmem:[%s6422_s2 + $0x1d0] sm:$0xff]  }
 0x166   : > { %4687 = vmatprep.subr.bf16.mxu0 %v4996_v26  ;;  %v2300_v9 = vsel %vm5765_vm12, %v4212_v8, %v2299_v46  ;;  %v2857_v36 = vrot.slane %v5924_v35, 5  ;;  %v5949_v1 = vld [vmem:[#allocation2 + $0x14] sm:$0x1]  ;;  %v2155_v10 = vsel %vm5198_vm2, %v2150_v3, %v2154_v5  ;;  %v4254_v48 = vrot.slane %v2832_v43, 9  ;;  %v5970_v63 = vld [vmem:[#allocation2 + $0x1c] sm:$0x1] }
 0x167   : > { %4650 = vmatpush3.bf16.msra.mxu1 %v4994_v20  ;;  %v2164_v19 = vrot.slane %v2163_v41, 4  ;;  %v4216_v44 = vcombine.low %v2296_v59, %v2300_v9  ;;  %v2861_v12 = vrot.slane %v5936_v62, 5  ;;  %v4200_v38 = vcombine.low %v5883_v33, %v5897_v37  ;;  %v5003_v14 = vld [vmem:[%s6422_s2 + $0x100] sm:$0xff]   ;;  %v5005_v45 = vld [vmem:[%s6422_s2 + $0x1c8] sm:$0xff]   ;;  %v2705_v27 = vld [vmem:[#allocation2 + $0x10] sm:$0xf] }
 0x168   : > { %4651 = vmatprep.subr.bf16.mxu1 %v4998_v61  ;;  %v2858_v16 = vsel %vm5765_vm12, %v4253_v17, %v2857_v36  ;;  %v3138_v0 = vshrl.u32 %v5940_v11, 16  ;;  %v3141_v60 = vshll.u32 %v5940_v11, 16  ;;  %v3147_v56 = vshll.u32 %v5949_v1, 16  ;;  %v2703_v53 = vld [vmem:[#allocation2 + $0x8] sm:$0xf]  ;;  %v5990_v39 = vld [vmem:[%s6422_s2 + $0x238] sm:$0xff]  }
 0x169   : > { %v2169_v7 = vsel %vm5198_vm2, %v2164_v19, %v2168_v18  ;;  %4688 = vmatpush3.bf16.msra.mxu0 %v4997_v58  ;;  %v3152_v15 = vshrl.u32 %v5942_v57, 16  ;;  %v2862_v22 = vsel %vm5765_vm12, %v4254_v48, %v2861_v12  ;;  %v3155_v26 = vshll.u32 %v5942_v57, 16  ;;  %v2833_v28 = vld [vmem:[#allocation2 + $0x18] sm:$0xe]  ;;  %v5995_v40 = vld [vmem:[#allocation2 + $0x24] sm:$0x1] }
 0x16a   : > { %2687 = vmatmul.mubr.bf16.gmra.mxu0 %v4199_v29  ;;  %v4204_v25 = vcombine.low %v2155_v10, %v2169_v7  ;;  %2534 = vmatmul.mubr.bf16.gmra.mxu1 %v4216_v44  ;;  %v3140_v20 = vrot.slane %v3138_v0, 4  ;;  %v4265_v30 = vcombine.low %v2858_v16, %v2862_v22  ;;  %v3143_v32 = vrot.slane %v3141_v60, 5  ;;  %v5992_v29 = vld [vmem:[#allocation2 + $0x1c] sm:$0x1]  ;;  %v5006_v3 = vld [vmem:[%s6422_s2 + $0x188] sm:$0xff]   ;;  %v5008_v36 = vld [vmem:[%s6422_s2 + $0x1c0] sm:$0xff]  }
 0x16b   : > { %4652 = vmatpush3.bf16.msra.mxu1 %v4999_v50  ;;  %4689 = vmatprep.subr.bf16.mxu0 %v5000_v21  ;;  %v3149_v31 = vrot.slane %v3147_v56, 5  ;;  %v3154_v34 = vrot.slane %v3152_v15, 4  ;;  %v3157_v47 = vrot.slane %v3155_v26, 5  ;;  %v3161_v55 = vshll.u32 %v5970_v63, 16  ;;  %v2834_v43 = vld [vmem:[#allocation2 + $0x20] sm:$0xe] }
 0x16c   : > { %2694 = vmatprep.mubr.bf16.mxu0 %v4204_v25  ;;  %4653 = vmatprep.subr.bf16.mxu1 %v5002_v49  ;;  %v2720_v58 = vshrl.u32 %v2703_v53, 16  ;;  %v2723_v61 = vshll.u32 %v2703_v53, 16  ;;  %v3144_v5 = vor.u32 %v3143_v32, %v3140_v20  ;;  %v2734_v8 = vshrl.u32 %v2705_v27, 16  ;;  %v6004_v48 = vld [vmem:[#allocation2 + $0x20] sm:$0xf]  ;;  %v6034_v53 = vld [vmem:[%s6423_s3 + $0x38] sm:$0xff]  }
 0x16d   : > { %3079 = vmatprep.mubr.bf16.mxu1 %v4265_v30  ;;  %4690 = vmatpush3.bf16.msra.mxu0 %v5001_v13  ;;  %v2737_v46 = vshll.u32 %v2705_v27, 16  ;;  %v4255_v41 = vrot.slane %v2833_v28, 9  ;;  %v3158_v18 = vor.u32 %v3157_v47, %v3154_v34  ;;  %v3163_v59 = vrot.slane %v3161_v55, 5  ;;  %v5009_v49 = vld [vmem:[%s6422_s2 + $0x180] sm:$0xff]   ;;  %v2707_v30 = vld [vmem:[#allocation2 + $0x18] sm:$0xf] }
 0x16e   : > { %4691 = vmatprep.subr.bf16.mxu0 %v5005_v45  ;;  %v2722_v17 = vrot.slane %v2720_v58, 4  ;;  %v2725_v9 = vrot.slane %v2723_v61, 5  ;;  %v3145_v10 = vrot.slane %v3144_v5, 4  ;;  %v2736_v19 = vrot.slane %v2734_v8, 4  ;;  %v6015_v45 = vld [vmem:[#allocation2 + $0x28] sm:$0xf] }
 0x16f   : > { %4654 = vmatpush3.bf16.msra.mxu1 %v5003_v14  ;;  %v2739_v44 = vrot.slane %v2737_v46, 5  ;;  %v2865_v50 = vrot.slane %v5992_v29, 5  ;;  %v3159_v21 = vrot.slane %v3158_v18, 4  ;;  %v4256_v12 = vrot.slane %v2834_v43, 9  ;;  %v6017_v60 = vld [vmem:[#allocation2 + $0x24] sm:$0x1] }
 0x170   : > { %4767 = vmatprep.subr.bf16.mxu1 %v5990_v39  ;;  %v2726_v16 = vor.u32 %v2725_v9, %v2722_v17  ;;  %v2869_v13 = vrot.slane %v5995_v40, 5  ;;  %v2731_v0 = vrot.slane %v2729_v23, 5  ;;  %v3150_v7 = vsel %vm5198_vm2, %v3145_v10, %v3149_v31  ;;  %v2709_v32 = vld [vmem:[#allocation2 + $0x20] sm:$0xf]  ;;  %v5010_v34 = vld [vmem:[%s6422_s2 + $0x230] sm:$0xff]  }
 0x171   : > { %4692 = vmatpush3.bf16.msra.mxu0 %v5006_v3  ;;  %v2740_v14 = vor.u32 %v2739_v44, %v2736_v19  ;;  %v6022_v56 = vrot.slane %v3242_v2, 4  ;;  %v2745_v15 = vrot.slane %v2743_v4, 5  ;;  %v3164_v35 = vsel %vm5198_vm2, %v3159_v21, %v3163_v59  ;;  %v6039_v4 = vld [vmem:[#allocation2 + $0x2c] sm:$0x1]  ;;  %v6063_v43 = vld [vmem:[%s6423_s3 + $0x30] sm:$0xff]  }
 0x172   : > { %2695 = vmatmul.mubr.bf16.gmra.mxu0 %v4200_v38  ;;  %v2727_v23 = vrot.slane %v2726_v16, 4  ;;  %4693 = vmatprep.subr.bf16.mxu0 %v5008_v36  ;;  %v3166_v42 = vshrl.u32 %v6004_v48, 16  ;;  %v4289_v24 = vcombine.low %v3150_v7, %v3164_v35  ;;  %v2866_v62 = vsel %vm5765_vm12, %v4255_v41, %v2865_v50  ;;  %v6058_v46 = vld [vmem:[#allocation2 + $0x2c] sm:$0x1]  ;;  %v2835_v59 = vld [vmem:[#allocation2 + $0x28] sm:$0xe] }
 0x173   : > { %v2741_v2 = vrot.slane %v2740_v14, 4  ;;  %v3169_v33 = vshll.u32 %v6004_v48, 16  ;;  %v2870_v37 = vsel %vm5765_vm12, %v4256_v12, %v2869_v13  ;;  %v3175_v25 = vshll.u32 %v6017_v60, 16  ;;  %v5013_v36 = vld [vmem:[%s6422_s2 + $0x228] sm:$0xff]   ;;  %v2836_v44 = vld [vmem:[#allocation2 + $0x30] sm:$0xe] }
 0x174   : > { %v3168_v38 = vrot.slane %v3166_v42, 4  ;;  %v3180_v22 = vshrl.u32 %v6015_v45, 16  ;;  %3449 = vmatprep.mubr.bf16.mxu0 %v4289_v24  ;;  %v2732_v20 = vsel %vm5198_vm2, %v2727_v23, %v2731_v0  ;;  %v3183_v28 = vshll.u32 %v6015_v45, 16  ;;  %v6071_v12 = vld [vmem:[#allocation2 + $0x34] sm:$0x1]  ;;  %v6083_v23 = vld [vmem:[%s6423_s3 + $0x28] sm:$0xff]  }
 0x175   : > { %v2746_v26 = vsel %vm5198_vm2, %v2741_v2, %v2745_v15  ;;  %4694 = vmatpush3.bf16.msra.mxu0 %v5009_v49  ;;  %v3171_v27 = vrot.slane %v3169_v33, 5  ;;  %v4285_v47 = vcombine.low %v5940_v11, %v5942_v57  ;;  %v3189_v58 = vshll.u32 %v6039_v4, 16  ;;  %v6076_v7 = vld [vmem:[#allocation2 + $0x30] sm:$0xf]  ;;  %v6085_v42 = vld [vmem:[#allocation2 + $0x34] sm:$0x1] }
 0x176   : > { %v4261_v31 = vcombine.low %v2732_v20, %v2746_v26  ;;  %4791 = vmatprep.subr.bf16.mxu0 %v6034_v53  ;;  %v3182_v55 = vrot.slane %v3180_v22, 4  ;;  %v4266_v61 = vcombine.low %v2866_v62, %v2870_v37  ;;  %v3177_v5 = vrot.slane %v3175_v25, 5  ;;  %v6090_v37 = vld [vmem:[#allocation2 + $0x38] sm:$0xf]  ;;  %v5015_v22 = vld [vmem:[%s6422_s2 + $0x220] sm:$0xff]  }
 0x177   : > { %v3172_v3 = vor.u32 %v3171_v27, %v3168_v38  ;;  %v3185_v8 = vrot.slane %v3183_v28, 5  ;;  %v2748_v41 = vshrl.u32 %v2707_v30, 16  ;;  %v2751_v18 = vshll.u32 %v2707_v30, 16  ;;  %v6097_v26 = vld [vmem:[#allocation2 + $0x3c] sm:$0x1] }
 0x178   : > { %3080 = vmatmul.mubr.bf16.vlgmr.msra.gmra.mxu1 %v4261_v31  ;;  %v2757_v11 = vshll.u32 %v5992_v29, 16  ;;  %v2762_v57 = vshrl.u32 %v2709_v32, 16  ;;  %v2765_v10 = vshll.u32 %v2709_v32, 16  ;;  %v2771_v19 = vshll.u32 %v5995_v40, 16  ;;  %v5032_v6 = vld [vmem:[%s5187_s16 + $0x108] ss:$8 sps:$4 sm:$0xff]  }
 0x179   : > { %4768 = vmatpush3.bf16.msra.mxu1 %v5990_v39  ;;  %3087 = vmatprep.mubr.bf16.mxu1 %v4266_v61  ;;  %v3173_v17 = vrot.slane %v3172_v3, 4  ;;  %v3186_v9 = vor.u32 %v3185_v8, %v3182_v55  ;;  %v3191_v50 = vrot.slane %v3189_v58, 5  ;;  %v2750_v21 = vrot.slane %v2748_v41, 4  ;;  %v6114_v58 = vld [vmem:[%s6423_s3 + $0x20] sm:$0xff]   ;;  %v2713_v41 = vld [vmem:[#allocation2 + $0x30] sm:$0xf] }
 0x17a   : > { %4769 = vmatprep.subr.bf16.mxu1 %v5010_v34  ;;  %3450 = vmatmul.mubr.bf16.vlgmr.msra.gmra.mxu0 %v4285_v47  ;;  %v2753_v29 = vrot.slane %v2751_v18, 5  ;;  %v2764_v16 = vrot.slane %v2762_v57, 4  ;;  %v2759_v49 = vrot.slane %v2757_v11, 5  ;;  %v2767_v0 = vrot.slane %v2765_v10, 5 }
 0x17b   : > { %v3178_v39 = vsel %vm5198_vm2, %v3173_v17, %v3177_v5  ;;  %v3187_v13 = vrot.slane %v3186_v9, 4  ;;  %4792 = vmatpush3.bf16.msra.mxu0 %v6034_v53  ;;  %v4257_v14 = vrot.slane %v2835_v59, 9  ;;  %v2873_v15 = vrot.slane %v6058_v46, 5  ;;  %v5018_v59 = vld [vmem:[%s6422_s2 + $0x218] sm:$0xff]  }
 0x17c   : > { %v2754_v40 = vor.u32 %v2753_v29, %v2750_v21  ;;  %v4258_v35 = vrot.slane %v2836_v44, 9  ;;  %4793 = vmatprep.subr.bf16.mxu0 %v6063_v43  ;;  %v2768_v2 = vor.u32 %v2767_v0, %v2764_v16  ;;  %v2773_v62 = vrot.slane %v2771_v19, 5  ;;  %v6123_v9 = vld [vmem:[#allocation2 + $0x3c] sm:$0x1] }
 0x17d   : > { %4770 = vmatpush3.bf16.msra.mxu1 %v5010_v34  ;;  %v3192_v24 = vsel %vm5198_vm2, %v3187_v13, %v3191_v50  ;;  %v2877_v33 = vrot.slane %v6071_v12, 5  ;;  %v4286_v20 = vcombine.low %v6004_v48, %v6015_v45  ;;  %v3194_v27 = vshrl.u32 %v6076_v7, 16  ;;  %v2711_v34 = vld [vmem:[#allocation2 + $0x28] sm:$0xf]  ;;  %v2837_v50 = vld [vmem:[#allocation2 + $0x38] sm:$0xe] }
 0x17e   : > { %v4290_v38 = vcombine.low %v3178_v39, %v3192_v24  ;;  %4771 = vmatprep.subr.bf16.mxu1 %v5013_v36  ;;  %v2755_v25 = vrot.slane %v2754_v40, 4  ;;  %v2769_v28 = vrot.slane %v2768_v2, 4  ;;  %v3197_v32 = vshll.u32 %v6076_v7, 16  ;;  %v6129_v21 = vld [vmem:[%s6423_s3 + $0x18] sm:$0xff]  }
 0x17f   : > { %v2878_v30 = vsel %vm5765_vm12, %v4258_v35, %v2877_v33  ;;  %4794 = vmatpush3.bf16.msra.mxu0 %v6063_v43  ;;  %v3203_v31 = vshll.u32 %v6085_v42, 16  ;;  %v2874_v48 = vsel %vm5765_vm12, %v4257_v14, %v2873_v15  ;;  %v3196_v45 = vrot.slane %v3194_v27, 4  ;;  %v2838_v35 = vld [vmem:[#allocation2 + $0x40] sm:$0xe] }
 0x180   : > { %3457 = vmatprep.mubr.bf16.mxu0 %v4290_v38  ;;  %v2760_v47 = vsel %vm5198_vm2, %v2755_v25, %v2759_v49  ;;  %4795 = vmatprep.subr.bf16.mxu0 %v6083_v23  ;;  %v3208_v55 = vshrl.u32 %v6090_v37, 16  ;;  %v2774_v61 = vsel %vm5198_vm2, %v2769_v28, %v2773_v62  ;;  %v4267_v3 = vcombine.low %v2874_v48, %v2878_v30  ;;  %v6132_v49 = vld [vmem:[#allocation2 + $0x44] sm:$0x1]  ;;  %v6143_v27 = vld [vmem:[#allocation2 + $0x40] sm:$0xf] }
 0x181   : > { %4772 = vmatpush3.bf16.msra.mxu1 %v5013_v36  ;;  %v3199_v5 = vrot.slane %v3197_v32, 5  ;;  %v3211_v8 = vshll.u32 %v6090_v37, 16  ;;  %v4262_v18 = vcombine.low %v2760_v47, %v2774_v61  ;;  %v3217_v57 = vshll.u32 %v6097_v26, 16 }
 0x182   : > { %4773 = vmatprep.subr.bf16.mxu1 %v5015_v22  ;;  %3458 = vmatmul.mubr.bf16.gmra.mxu0 %v4286_v20  ;;  %v3210_v11 = vrot.slane %v3208_v55, 4  ;;  %v2776_v17 = vshrl.u32 %v2711_v34, 16  ;;  %v3205_v36 = vrot.slane %v3203_v31, 5  ;;  %v2779_v44 = vshll.u32 %v2711_v34, 16  ;;  %v6154_v31 = vld [vmem:[%s6423_s3 + $0x10] sm:$0xff]  }
 0x183   : > { %v3200_v10 = vor.u32 %v3199_v5, %v3196_v45  ;;  %v3213_v19 = vrot.slane %v3211_v8, 5  ;;  %4796 = vmatpush3.bf16.msra.mxu0 %v6083_v23  ;;  %3088 = vmatmul.mubr.bf16.gmra.mxu1 %v4262_v18  ;;  %v2785_v16 = vshll.u32 %v6058_v46, 16  ;;  %v2790_v39 = vshrl.u32 %v2713_v41, 16  ;;  %v5020_v46 = vld [vmem:[%s6422_s2 + $0x210] sm:$0xff]   ;;  %v2715_v55 = vld [vmem:[#allocation2 + $0x38] sm:$0xf] }
 0x184   : > { %v2778_v29 = vrot.slane %v2776_v17, 4  ;;  %v2793_v13 = vshll.u32 %v2713_v41, 16  ;;  %4797 = vmatprep.subr.bf16.mxu0 %v6114_v58  ;;  %3095 = vmatprep.mubr.bf16.mxu1 %v4267_v3  ;;  %v3219_v14 = vrot.slane %v3217_v57, 5  ;;  %v2781_v15 = vrot.slane %v2779_v44, 5  ;;  %v5023_v41 = vld [vmem:[%s6422_s2 + $0x208] sm:$0xff]  }
 0x185   : > { %4774 = vmatpush3.bf16.msra.mxu1 %v5015_v22  ;;  %v3201_v0 = vrot.slane %v3200_v10, 4  ;;  %v3214_v40 = vor.u32 %v3213_v19, %v3210_v11  ;;  %v2792_v24 = vrot.slane %v2790_v39, 4  ;;  %v2799_v62 = vshll.u32 %v6071_v12, 16  ;;  %v2717_v17 = vld [vmem:[#allocation2 + $0x40] sm:$0xf] }
 0x186   : > { %4775 = vmatprep.subr.bf16.mxu1 %v5018_v59  ;;  %v2795_v2 = vrot.slane %v2793_v13, 5  ;;  %v4259_v33 = vrot.slane %v2837_v50, 9  ;;  %v2782_v22 = vor.u32 %v2781_v15, %v2778_v29  ;;  %v2881_v20 = vrot.slane %v6123_v9, 5  ;;  %v6180_v50 = vld [vmem:[%s6423_s3 + $0x8] sm:$0xff]   ;;  %v5025_v39 = vld [vmem:[%s6422_s2 + $0x200] sm:$0xff]  }
 0x187   : > { %v3206_v38 = vsel %vm5198_vm2, %v3201_v0, %v3205_v36  ;;  %v3215_v25 = vrot.slane %v3214_v40, 4  ;;  %4798 = vmatpush3.bf16.msra.mxu0 %v6114_v58  ;;  %v4260_v30 = vrot.slane %v2838_v35, 9  ;;  %v2885_v12 = vrot.slane %v6132_v49, 5  ;;  %v3490_v15 = vld [vmem:[#allocation2 + $0x10] sm:$0xe] }
 0x188   : > { %v2796_v28 = vor.u32 %v2795_v2, %v2792_v24  ;;  %4799 = vmatprep.subr.bf16.mxu0 %v6129_v21  ;;  %v6149_v32 = vrot.slane %v3245_v52, 5  ;;  %v2783_v47 = vrot.slane %v2782_v22, 4  ;;  %v2787_v48 = vrot.slane %v2785_v16, 5  ;;  %v6160_v52 = vld [vmem:[#allocation2 + $0x44] sm:$0x1] }
 0x189   : > { %v3220_v34 = vsel %vm5198_vm2, %v3215_v25, %v3219_v14  ;;  %v2801_v45 = vrot.slane %v2799_v62, 5  ;;  %4776 = vmatpush3.bf16.msra.mxu1 %v5018_v59  ;;  %v2886_v5 = vsel %vm5765_vm12, %v4260_v30, %v2885_v12  ;;  %v3222_v8 = vshrl.u32 %v6143_v27, 16  ;;  %v3491_v25 = vld [vmem:[#allocation2 + $0x18] sm:$0xe]  ;;  %v6197_v22 = vld [vmem:[%s6423_s3] sm:$0xff]  }
 0x18a   : > { %v4291_v61 = vcombine.low %v3206_v38, %v3220_v34  ;;  %v2797_v3 = vrot.slane %v2796_v28, 4  ;;  %4777 = vmatprep.subr.bf16.mxu1 %v5020_v46  ;;  %v2788_v18 = vsel %vm5198_vm2, %v2783_v47, %v2787_v48  ;;  %v2882_v11 = vsel %vm5765_vm12, %v4259_v33, %v2881_v20 }
 0x18b   : > { %v4287_v57 = vcombine.low %v6076_v7, %v6090_v37  ;;  %v3225_v59 = vshll.u32 %v6143_v27, 16  ;;  %4800 = vmatpush3.bf16.msra.mxu0 %v6129_v21  ;;  %v3224_v36 = vrot.slane %v3222_v8, 4  ;;  %v2804_v19 = vshrl.u32 %v2715_v55, 16  ;;  %v3493_v8 = vld [vmem:[#allocation2 + $0x28] sm:$0xe] }
 0x18c   : > { %3465 = vmatprep.mubr.bf16.mxu0 %v4291_v61  ;;  %v2802_v10 = vsel %vm5198_vm2, %v2797_v3, %v2801_v45  ;;  %v2807_v44 = vshll.u32 %v2715_v55, 16  ;;  %4801 = vmatprep.subr.bf16.mxu0 %v6154_v31  ;;  %v4268_v37 = vcombine.low %v2882_v11, %v2886_v5  ;;  %v3231_v16 = vshll.u32 %v6160_v52, 16  ;;  %v5029_v61 = vld [vmem:[%s5187_s16 + $0xd8] ss:$8 sps:$4 sm:$0xff]   ;;  %v5033_v3 = vld [vmem:[#allocation2 + $0x48] sm:$0xf] }
 0x18d   : > { %v4263_v7 = vcombine.low %v2788_v18, %v2802_v10  ;;  %4778 = vmatpush3.bf16.msra.mxu1 %v5020_v46  ;;  %3466 = vmatmul.mubr.bf16.gmra.mxu0 %v4287_v57  ;;  %v3227_v29 = vrot.slane %v3225_v59, 5  ;;  %v2806_v13 = vrot.slane %v2804_v19, 4  ;;  %v2818_v40 = vshrl.u32 %v2717_v17, 16  ;;  %v3494_v18 = vld [vmem:[#allocation2 + $0x30] sm:$0xe] }
 0x18e   : > { %4779 = vmatprep.subr.bf16.mxu1 %v5023_v41  ;;  %v2809_v0 = vrot.slane %v2807_v44, 5  ;;  %v2821_v14 = vshll.u32 %v2717_v17, 16  ;;  %v3248_v24 = vsel %vm5198_vm2, %v6022_v56, %v6149_v32  ;;  %v2813_v2 = vshll.u32 %v6123_v9, 16  ;;  %v3492_v59 = vld [vmem:[#allocation2 + $0x20] sm:$0xe] }
 0x18f   : > { %3096 = vmatmul.mubr.bf16.gmra.mxu1 %v4263_v7  ;;  %v3228_v35 = vor.u32 %v3227_v29, %v3224_v36  ;;  %4802 = vmatpush3.bf16.msra.mxu0 %v6154_v31  ;;  %v2820_v33 = vrot.slane %v2818_v40, 4  ;;  %v2827_v38 = vshll.u32 %v6132_v49, 16  ;;  %v3233_v56 = vrot.slane %v3231_v16, 5  ;;  %v3495_v36 = vld [vmem:[#allocation2 + $0x38] sm:$0xe] }
 0x190   : > { %3103 = vmatprep.mubr.bf16.mxu1 %v4268_v37  ;;  %v2810_v62 = vor.u32 %v2809_v0, %v2806_v13  ;;  %v2823_v46 = vrot.slane %v2821_v14, 5  ;;  %4803 = vmatprep.subr.bf16.mxu0 %v6180_v50  ;;  %v4309_v9 = vrot.slane %v3490_v15, 9  ;;  %v3516_v28 = vrot.slane %v5949_v1, 5  ;;  %v5030_v16 = vld [vmem:[%s5187_s16 + $0xe8] ss:$8 sps:$4 sm:$0xff]  }
 0x191   : > { %v3229_v20 = vrot.slane %v3228_v35, 4  ;;  %4780 = vmatpush3.bf16.msra.mxu1 %v5023_v41  ;;  %v4310_v32 = vrot.slane %v3491_v25, 9  ;;  %v3520_v34 = vrot.slane %v5970_v63, 5  ;;  %v2815_v48 = vrot.slane %v2813_v2, 5  ;;  %v3496_v0 = vld [vmem:[#allocation2 + $0x40] sm:$0xe] }
 0x192   : > { %v2811_v30 = vrot.slane %v2810_v62, 4  ;;  %v2824_v12 = vor.u32 %v2823_v46, %v2820_v33  ;;  %4781 = vmatprep.subr.bf16.mxu1 %v5025_v39  ;;  %v2829_v55 = vrot.slane %v2827_v38, 5  ;;  %v3517_v1 = vsel %vm5765_vm12, %v4309_v9, %v3516_v28  ;;  %v5031_v33 = vld [vmem:[%s5187_s16 + $0xf8] ss:$8 sps:$4 sm:$0xff]  }
 0x193   : > { %v3234_v49 = vsel %vm5198_vm2, %v3229_v20, %v3233_v56  ;;  %4804 = vmatpush3.bf16.msra.mxu0 %v6180_v50  ;;  %v4288_v5 = vcombine.low %v6143_v27, %v5033_v3  ;;  %v3521_v57 = vsel %vm5765_vm12, %v4310_v32, %v3520_v34  ;;  %v3528_v27 = vrot.slane %v6039_v4, 5 }
 0x194   : > { %v4292_v47 = vcombine.low %v3234_v49, %v3248_v24  ;;  %v2825_v45 = vrot.slane %v2824_v12, 4  ;;  %4805 = vmatprep.subr.bf16.mxu0 %v6197_v22  ;;  %v2816_v63 = vsel %vm5198_vm2, %v2811_v30, %v2815_v48  ;;  %v4317_v17 = vcombine.low %v3517_v1, %v3521_v57 }
 0x195   : > { %4782 = vmatpush3.bf16.msra.mxu1 %v5025_v39  ;;  %v4312_v10 = vrot.slane %v3493_v8, 9  ;;  %v4313_v54 = vrot.slane %v3494_v18, 9  ;;  %v3532_v19 = vrot.slane %v6085_v42, 5  ;;  %v3524_v44 = vrot.slane %v6017_v60, 5  ;;  %v3497_v39 = vld [vmem:[#allocation2 + $0x48] sm:$0xe] }
 0x196   : > { %3473 = vmatprep.mubr.bf16.mxu0 %v4292_v47  ;;  %v2830_v41 = vsel %vm5198_vm2, %v2825_v45, %v2829_v55  ;;  %4815 = vmatprep.subr.bf16.mxu1 %v6034_v53  ;;  %v4311_v7 = vrot.slane %v3492_v59, 9  ;;  %v4314_v37 = vrot.slane %v3495_v36, 9  ;;  %v3536_v29 = vrot.slane %v6097_v26, 5 }
 0x197   : > { %v4264_v11 = vcombine.low %v2816_v63, %v2830_v41  ;;  %3474 = vmatmul.mubr.bf16.gmra.mxu0 %v4288_v5  ;;  %v3529_v4 = vsel %vm5765_vm12, %v4312_v10, %v3528_v27  ;;  %v3533_v13 = vsel %vm5765_vm12, %v4313_v54, %v3532_v19  ;;  %v4316_v14 = vrot.slane %v3497_v39, 9 }
 0x198   : > { %4806 = vmatpush3.bf16.msra.mxu0 %v6197_v22  ;;  %4807 = vmatprep.mubr.bf16.mxu0 %v5029_v61  ;;  %v3525_v40 = vsel %vm5765_vm12, %v4311_v7, %v3524_v44  ;;  %v3537_v60 = vsel %vm5765_vm12, %v4314_v37, %v3536_v29  ;;  %v4315_v15 = vrot.slane %v3496_v0, 9  ;;  %v3540_v35 = vrot.slane %v6160_v52, 5 }
 0x199   : > { %3104 = vmatmul.mubr.bf16.gmra.mxu1 %v4264_v11  ;;  %v4318_v42 = vcombine.low %v3525_v40, %v3529_v4  ;;  %v4319_v26 = vcombine.low %v3533_v13, %v3537_v60  ;;  %v3544_v24 = vrot.slane %v5908_v51, 5 }
 0x19a   : > { %4783 = vmatprep.mubr.bf16.mxu1 %v4317_v17  ;;  %v3541_v2 = vsel %vm5765_vm12, %v4315_v15, %v3540_v35 }
 0x19b   : > { %v3545_v62 = vsel %vm5765_vm12, %v4316_v14, %v3544_v24 }
 0x19c   : > { %v4320_v52 = vcombine.low %v3541_v2, %v3545_v62 }
 0x19f   : > { %4808 = vmatmul.mubr.bf16.vlgmr.msra.gmra.mxu0 %v5030_v16 }
 0x1a1   : > { %4784 = vmatmul.mubr.bf16.vlgmr.msra.gmra.mxu1 %v4318_v42 }
 0x1a2   : > { %4823 = vmatpush3.bf16.msra.mxu1 %v6034_v53  ;;  %4787 = vmatprep.mubr.bf16.mxu1 %v4319_v26 }
 0x1a3   : > { %4816 = vmatprep.subr.bf16.mxu1 %v6063_v43 }
 0x1a6   : > { %4824 = vmatpush3.bf16.msra.mxu1 %v6063_v43 }
 0x1a7   : > { %4817 = vmatprep.subr.bf16.mxu1 %v6083_v23 }
 0x1a9   : > { %4788 = vmatmul.mubr.bf16.gmra.mxu1 %v4320_v52 }
 0x1aa   : > { %4825 = vmatpush3.bf16.msra.mxu1 %v6083_v23  ;;  %4811 = vmatprep.mubr.bf16.mxu1 %v5031_v33 }
 0x1ab   : > { %4818 = vmatprep.subr.bf16.mxu1 %v6114_v58 }
 0x1ae   : > { %4826 = vmatpush3.bf16.msra.mxu1 %v6114_v58 }
 0x1af   : > { %4819 = vmatprep.subr.bf16.mxu1 %v6129_v21 }
 0x1b2   : > { %4827 = vmatpush3.bf16.msra.mxu1 %v6129_v21 }
 0x1b3   : > { %4820 = vmatprep.subr.bf16.mxu1 %v6154_v31 }
 0x1b6   : > { %4828 = vmatpush3.bf16.msra.mxu1 %v6154_v31 }
 0x1b7   : > { %4821 = vmatprep.subr.bf16.mxu1 %v6180_v50 }
 0x1ba   : > { %4829 = vmatpush3.bf16.msra.mxu1 %v6180_v50 }
 0x1bb   : > { %4822 = vmatprep.subr.bf16.mxu1 %v6197_v22 }
 0x1be   : > { %4830 = vmatpush3.bf16.msra.mxu1 %v6197_v22 }
 0x1c1   : > { %4812 = vmatmul.mubr.bf16.vlgmr.msra.gmra.mxu1 %v5032_v6 }
 0x210   : > { %v6253_v51 = vpop.f32.mrf.mxu1 }
 0x212   : > { %v6255_v53 = vpop.f32.mrf.mxu1 }
 0x214   : > { %v6257_v43 = vpop.f32.mrf.mxu1 }
 0x216   : > { %v6259_v23 = vpop.f32.mrf.mxu1 }
 0x218   : > { %v6261_v58 = vpop.f32.mrf.mxu0  ;;  %v6263_v21 = vpop.f32.mrf.mxu1 }
 0x21a   : > { %v4616_v31 = vpop.f32.mrf.mxu0  ;;  %v6265_v50 = vpop.f32.mrf.mxu1 }
 0x21c   : > { %v6267_v46 = vpop.f32.mrf.mxu0  ;;  %v6269_v38 = vpop.f32.mrf.mxu1 }
 0x21e   : > { %v6271_v25 = vpop.f32.mrf.mxu0  ;;  %v6273_v22 = vpop.f32.mrf.mxu1 }
 0x222   : > { %v4621_v20 = vpop.f32.mrf.mxu0  ;;  %v4587_v56 = vpop.f32.mrf.mxu1 }
 0x224   : > { %v4622_v9 = vpop.f32.mrf.mxu0  ;;  %v4588_v28 = vpop.f32.mrf.mxu1 }
 0x225   : > { %v4589_v30 = vadd.f32 %v4588_v28, %v4587_v56 }
 0x226   : > { %v4624_v12 = vpop.f32.mrf.mxu0  ;;  %v4590_v49 = vpop.f32.mrf.mxu1 }
 0x228   : > { %v4625_v32 = vpop.f32.mrf.mxu0  ;;  %v4591_v34 = vpop.f32.mrf.mxu1 }
 0x229   : > { %v4592_v47 = vadd.f32 %v4591_v34, %v4590_v49  ;;  %v4617_v49 = vadd.f32 %v4616_v31, %v6261_v58  ;;  %v4620_v31 = vadd.f32 %v6271_v25, %v6267_v46  ;;  %v6335_v46 = vld [vmem:[%s6424_s4 + $0x4] ss:$0 sm:$0xff] }
 0x22a   : > { %v4627_v48 = vpop.f32.mrf.mxu0  ;;  %v4593_v45 = vpop.f32.mrf.mxu1 }
 0x22c   : > { %v4628_v55 = vpop.f32.mrf.mxu0  ;;  %v4594_v61 = vpop.f32.mrf.mxu1 }
 0x22d   : > { %v4629_v1 = vadd.f32 %v4628_v55, %v4627_v48  ;;  %v4595_v3 = vadd.f32 %v4594_v61, %v4593_v45  ;;  %v4583_v48 = vadd.f32 %v6265_v50, %v6263_v21  ;;  %v4577_v55 = vadd.f32 %v6255_v53, %v6253_v51 }
 0x22e   : > { %v4630_v5 = vpop.f32.mrf.mxu0  ;;  %v6277_v41 = vpop.f32.mrf.mxu1  ;;  %v4586_v51 = vadd.f32 %v6273_v22, %v6269_v38  ;;  %v6340_v22 = vld [vmem:[%s6424_s4 + $0x2] ss:$0 sm:$0xff] }
 0x22f   : > { %v6275_v8 = vadd.f32 %v4629_v1, %v4589_v30  ;;  %v4623_v30 = vadd.f32 %v4622_v9, %v4621_v20  ;;  %v4626_v20 = vadd.f32 %v4625_v32, %v4624_v12  ;;  %v2673_v58 = vadd.f32 %v4617_v49, %v4577_v55 }
 0x230   : > { %v4631_v63 = vpop.f32.mrf.mxu0  ;;  %v6281_v59 = vpop.f32.mrf.mxu1 }
 0x231   : > { %v4632_v18 = vadd.f32 %v4631_v63, %v4630_v5  ;;  %v2681_v5 = vadd.f32 %v4623_v30, %v4583_v48  ;;  %v2684_v25 = vadd.f32 %v4626_v20, %v4586_v51 }
 0x232   : > { %v4633_v11 = vpop.f32.mrf.mxu0 }
 0x233   : > { %v6279_v57 = vadd.f32 %v4632_v18, %v4592_v47 }
 0x234   : > { %v4634_v27 = vpop.f32.mrf.mxu0 }
 0x235   : > { %v4635_v17 = vadd.f32 %v4634_v27, %v4633_v11  ;;  %v4580_v11 = vadd.f32 %v6259_v23, %v6257_v43 }
 0x236   : > { %v6283_v10 = vpop.f32.mrf.mxu0 }
 0x237   : > { %v6285_v36 = vadd.f32 %v4635_v17, %v4595_v3 }
 0x238   : > { %v4655_v54 = vpop.f32.mrf.mxu1  ;;  %v6287_v19 = vpop.f32.mrf.mxu0 }
 0x23a   : > { %v4656_v44 = vpop.f32.mrf.mxu1  ;;  %v4695_v7 = vpop.f32.mrf.mxu0 }
 0x23b   : > { %v4657_v61 = vadd.f32 %v4656_v44, %v4655_v54 }
 0x23c   : > { %v4658_v37 = vpop.f32.mrf.mxu1  ;;  %v4696_v29 = vpop.f32.mrf.mxu0 }
 0x23d   : > { %v4697_v63 = vadd.f32 %v4696_v29, %v4695_v7  ;;  %v3112_v27 = vadd.f32 %v4657_v61, %v2673_v58  ;;  %v2676_v7 = vadd.f32 %v4620_v31, %v4580_v11 }
 0x23e   : > { %v4698_v16 = vpop.f32.mrf.mxu0  ;;  %v4659_v4 = vpop.f32.mrf.mxu1 }
 0x23f   : > { %v4660_v12 = vadd.f32 %v4659_v4, %v4658_v37  ;;  %v3482_v43 = vadd.f32 %v4697_v63, %v3112_v27 }
 0x240   : > { %v4699_v39 = vpop.f32.mrf.mxu0 }
 0x241   : > { %v4700_v37 = vadd.f32 %v4699_v39, %v4698_v16  ;;  %v6354_v39 = vld [vmem:[%s6424_s4 + $0x3] ss:$0 sm:$0xff] }
 0x242   : > { %v4701_v13 = vpop.f32.mrf.mxu0 }
 0x243   : > { %v4661_v0 = vpop.f32.mrf.mxu1 }
 0x244   : > { %v4702_v40 = vpop.f32.mrf.mxu0 }
 0x245   : > { %v4662_v42 = vpop.f32.mrf.mxu1  ;;  %v4703_v9 = vadd.f32 %v4702_v40, %v4701_v13 }
 0x246   : > { %v4704_v60 = vpop.f32.mrf.mxu0  ;;  %v4663_v45 = vadd.f32 %v4662_v42, %v4661_v0  ;;  %v3113_v0 = vadd.f32 %v4660_v12, %v2676_v7  ;;  %v6346_v42 = vld [vmem:[%s6424_s4 + $0x5] ss:$0 sm:$0xff] }
 0x247   : > { %v4664_v14 = vpop.f32.mrf.mxu1 }
 0x248   : > { %v4705_v26 = vpop.f32.mrf.mxu0  ;;  %v3114_v53 = vadd.f32 %v4663_v45, %v2681_v5  ;;  %v3483_v5 = vadd.f32 %v4700_v37, %v3113_v0  ;;  %v4638_v0 = vadd.f32 %v6287_v19, %v6283_v10 }
 0x249   : > { %v4665_v15 = vpop.f32.mrf.mxu1  ;;  %v4706_v54 = vadd.f32 %v4705_v26, %v4704_v60 }
 0x24a   : > { %v4666_v50 = vadd.f32 %v4665_v15, %v4664_v14  ;;  %v3484_v44 = vadd.f32 %v4703_v9, %v3114_v53 }
 0x24c   : > { %v3115_v29 = vadd.f32 %v4666_v50, %v2684_v25 }
 0x24d   : > { %v6289_v35 = vpop.f32.mrf.mxu0 }
 0x24e   : > { %v3485_v30 = vadd.f32 %v4706_v54, %v3115_v29 }
 0x24f   : > { %v6291_v24 = vpop.f32.mrf.mxu1  ;;  %v6293_v2 = vpop.f32.mrf.mxu0 }
 0x251   : > { %v6295_v62 = vpop.f32.mrf.mxu1  ;;  %v6297_v33 = vpop.f32.mrf.mxu0 }
 0x253   : > { %v6299_v52 = vpop.f32.mrf.mxu1  ;;  %v6301_v6 = vpop.f32.mrf.mxu0 }
 0x255   : > { %v6303_v56 = vpop.f32.mrf.mxu1 }
 0x256   : > { %v4672_v19 = vadd.f32 %v6303_v56, %v6299_v52 }
 0x257   : > { %v6305_v28 = vpop.f32.mrf.mxu0 }
 0x259   : > { %v6308_v34 = vpop.f32.mrf.mxu1  ;;  %v6310_v47 = vpop.f32.mrf.mxu0 }
 0x25b   : > { %v6316_v1 = vpop.f32.mrf.mxu1  ;;  %v6318_v3 = vpop.f32.mrf.mxu0 }
 0x25d   : > { %v6322_v18 = vpop.f32.mrf.mxu1  ;;  %v6324_v21 = vpop.f32.mrf.mxu0 }
 0x25f   : > { %v6330_v32 = vpop.f32.mrf.mxu1  ;;  %v4809_v17 = vpop.f32.mrf.mxu0 }
 0x260   : > { %v3893_v13 = vmul.f32 %v4809_v17, %v6335_v46 }
 0x261   : > { %v4785_v38 = vpop.f32.mrf.mxu1  ;;  %v3855_v23 = vpop.f32.mrf.mxu0 }
 0x262   : > { %v3693_v4 = vadd.f32 %v4785_v38, %v3484_v44  ;;  %v3891_v60 = vmul.f32 %v6335_v46, %v3855_v23  ;;  %v3906_v61 = vadd.f32 %v6346_v42, %v3893_v13 }
 0x263   : > { %v3660_v40 = vpop.f32.mrf.mxu1  ;;  %v4810_v14 = vpop.f32.mrf.mxu0 }
 0x264   : > { %v3706_v26 = vmul.f32 %v6340_v22, %v3693_v4  ;;  %v3691_v15 = vadd.f32 %v3660_v40, %v3482_v43  ;;  %v3894_v16 = vmul.f32 %v4810_v14, %v6335_v46  ;;  %v3904_v9 = vadd.f32 %v6346_v42, %v3891_v60 }
 0x265   : > { %v4786_v49 = vpop.f32.mrf.mxu1  ;;  %v3858_v48 = vpop.f32.mrf.mxu0  ;;  %v4675_v40 = vadd.f32 %v6316_v1, %v6308_v34  ;;  %v4669_v60 = vadd.f32 %v6295_v62, %v6291_v24  ;;  %v4718_v24 = vadd.f32 %v6324_v21, %v6318_v3  ;;  %v4712_v62 = vadd.f32 %v6301_v6, %v6297_v33 }
 0x266   : > { %v3704_v45 = vmul.f32 %v6340_v22, %v3691_v15  ;;  %v3694_v55 = vadd.f32 %v4786_v49, %v3485_v30  ;;  %v3892_v58 = vmul.f32 %v6335_v46, %v3858_v48  ;;  %v3719_v31 = vadd.f32 %v6354_v39, %v3706_v26 }
 0x267   : > { %v3663_v20 = vpop.f32.mrf.mxu1  ;;  %v3907_v53 = vadd.f32 %v6346_v42, %v3894_v16  ;;  %v4598_v26 = vadd.f32 %v6281_v59, %v6277_v41  ;;  %v4678_v15 = vadd.f32 %v6330_v32, %v6322_v18  ;;  %v4715_v30 = vadd.f32 %v6310_v47, %v6305_v28 }
 0x268   : > { %v3707_v63 = vmul.f32 %v6340_v22, %v3694_v55  ;;  %v3692_v51 = vadd.f32 %v3663_v20, %v3483_v5  ;;  %v3717_v50 = vadd.f32 %v6354_v39, %v3704_v45  ;;  %v3914_v27 = vadd.f32 %v3906_v61, %v3719_v31 }
 0x269   : > { %v3905_v17 = vadd.f32 %v6346_v42, %v3892_v58  ;;  %v4789_v13 = vpop.f32.mrf.mxu1  ;;  %v4709_v16 = vadd.f32 %v6293_v2, %v6289_v35  ;;  %v2700_v10 = vadd.f32 %v4638_v0, %v4598_v26  ;;  %v3118_v34 = vadd.f32 %v4675_v40, %v6285_v36 }
 0x26a   : > { %v3720_v11 = vadd.f32 %v6354_v39, %v3707_v63  ;;  %v3705_v12 = vmul.f32 %v6340_v22, %v3692_v51  ;;  %v3912_v54 = vadd.f32 %v3904_v9, %v3717_v50  ;;  %v3922_v7 = vmax.f32 %v3914_v27, 0.0 }
 0x26b   : > { %v3676_v14 = vpop.f32.mrf.mxu1  ;;  %v3116_v41 = vadd.f32 %v4669_v60, %v6275_v8  ;;  %v3119_v1 = vadd.f32 %v4678_v15, %v2700_v10  ;;  %v3488_v28 = vadd.f32 %v4715_v30, %v3118_v34  ;;  %v3117_v35 = vadd.f32 %v4672_v19, %v6279_v57 }
 0x26c   : > { %v3718_v25 = vadd.f32 %v6354_v39, %v3705_v12  ;;  %v3915_v44 = vadd.f32 %v3907_v53, %v3720_v11  ;;  %v3920_v23 = vmax.f32 %v3912_v54, 0.0 }
 0x26d   : > { %v4790_v59 = vpop.f32.mrf.mxu1  ;;  %v3486_v47 = vadd.f32 %v4709_v16, %v3116_v41  ;;  %v3697_v2 = vadd.f32 %v4789_v13, %v3488_v28  ;;  %v3489_v18 = vadd.f32 %v4718_v24, %v3119_v1  ;;  %v3487_v36 = vadd.f32 %v4712_v62, %v3117_v35 }
 0x26e   : > { %v3923_v38 = vmax.f32 %v3915_v44, 0.0  ;;  %v3913_v43 = vadd.f32 %v3905_v17, %v3718_v25 }
 0x26f   : > { %v3695_v32 = vadd.f32 %v3676_v14, %v3486_v47  ;;  %v3679_v52 = vpop.f32.mrf.mxu1  ;;  %v3698_v56 = vadd.f32 %v4790_v59, %v3489_v18  ;;  %v3710_v3 = vmul.f32 %v6340_v22, %v3697_v2 }
 0x270   : > { %v4372_v37 = vpack.c.bf16 %v3923_v38, %v3922_v7  ;;  %v3921_v29 = vmax.f32 %v3913_v43, 0.0  ;;  %v3696_v21 = vadd.f32 %v3679_v52, %v3487_v36 }
 0x271   : > { %v3708_v48 = vmul.f32 %v6340_v22, %v3695_v32  ;;  %v3711_v6 = vmul.f32 %v6340_v22, %v3698_v56  ;;  %v3723_v61 = vadd.f32 %v6354_v39, %v3710_v3 }
 0x272   : > { %4384 = vst [vmem:[%s6372_s6 + $0x8] sm:$0xff] %v4372_v37   ;;  %v4367_v4 = vpack.c.bf16 %v3921_v29, %v3920_v23  ;;  %v3709_v5 = vmul.f32 %v6340_v22, %v3696_v21 }
 0x273   : > { %v3721_v58 = vadd.f32 %v6354_v39, %v3708_v48  ;;  %v3724_v63 = vadd.f32 %v6354_v39, %v3711_v6 }
 0x274   : > { %4368 = vst [vmem:[%s6372_s6] sm:$0xff] %v4367_v4   ;;  %v3722_v11 = vadd.f32 %v6354_v39, %v3709_v5 }
 0x281   : > { %v4813_v49 = vpop.f32.mrf.mxu1 }
 0x282   : > { %v3897_v8 = vmul.f32 %v4813_v49, %v6335_v46 }
 0x283   : > { %v3871_v33 = vpop.f32.mrf.mxu1 }
 0x284   : > { %v3910_v45 = vadd.f32 %v6346_v42, %v3897_v8  ;;  %v3895_v57 = vmul.f32 %v6335_v46, %v3871_v33 }
 0x285   : > { %v4814_v55 = vpop.f32.mrf.mxu1 }
 0x286   : > { %v3908_v20 = vadd.f32 %v6346_v42, %v3895_v57  ;;  %v3898_v9 = vmul.f32 %v4814_v55, %v6335_v46  ;;  %v3918_v51 = vadd.f32 %v3910_v45, %v3723_v61 }
 0x287   : > { %v3874_v31 = vpop.f32.mrf.mxu1 }
 0x288   : > { %v3911_v53 = vadd.f32 %v6346_v42, %v3898_v9  ;;  %v3896_v50 = vmul.f32 %v6335_v46, %v3874_v31  ;;  %v3916_v27 = vadd.f32 %v3908_v20, %v3721_v58  ;;  %v3926_v17 = vmax.f32 %v3918_v51, 0.0 }
 0x28a   : > { %v3919_v22 = vadd.f32 %v3911_v53, %v3724_v63  ;;  %v3909_v12 = vadd.f32 %v6346_v42, %v3896_v50  ;;  %v3924_v44 = vmax.f32 %v3916_v27, 0.0 }
 0x28c   : > { %v3927_v25 = vmax.f32 %v3919_v22, 0.0  ;;  %v3917_v54 = vadd.f32 %v3909_v12, %v3722_v11 }
 0x28e   : > { %v4382_v7 = vpack.c.bf16 %v3927_v25, %v3926_v17  ;;  %v3925_v38 = vmax.f32 %v3917_v54, 0.0 }
 0x290   : > { %4386 = vst [vmem:[%s6372_s6 + $0x18] sm:$0xff] %v4382_v7   ;;  %v4377_v43 = vpack.c.bf16 %v3925_v38, %v3924_v44 }
 0x292   : > { %4385 = vst [vmem:[%s6372_s6 + $0x10] sm:$0xff] %v4377_v43  }
 0x293 PF: > { %s15_s18 = sadd.s32 1, %s5040_s18  }
 0x294   : > { %p12_p4 = scmp.ge.s32.totalorder %s15_s18, 4  }
 0x296   :  { %14 = sbr.rel (!%p12_p4) target bundleno = 1 (0x1), region = 78 }

</bundles_post_ra>
